<compile_context>
chip_gen: v7x
topology: tpu7x:2x2x1
jax: 0.10.0
libtpu: 0.0.40
codegen_flags: <defaults>
</compile_context>

<pallas_src>
import functools
import math

import jax
import jax.numpy as jnp
from jax.experimental import pallas as pl
from jax.experimental.pallas import tpu as pltpu

VMEM = pl.BlockSpec(memory_space=pltpu.MemorySpace.VMEM)
SMEM = pl.BlockSpec(memory_space=pltpu.MemorySpace.SMEM)


# ---------------------------------------------------------------------------
# In-kernel building blocks (operate on values, called from the fused kernel)
# ---------------------------------------------------------------------------
def _mlp(x_f32, w1_bf16, b1_f32, w2_bf16, b2_f32):
    # Linear -> ReLU -> Linear.  bf16 MXU inputs, f32 accumulation & biases.
    h = jnp.dot(x_f32.astype(jnp.bfloat16), w1_bf16,
                preferred_element_type=jnp.float32) + b1_f32
    h = jnp.maximum(h, 0.0)
    return jnp.dot(h.astype(jnp.bfloat16), w2_bf16,
                   preferred_element_type=jnp.float32) + b2_f32


def _encoder(y_f32, pos_f32, w1y_bf16, w1p_bf16, b1_f32, w2_bf16, b2_f32):
    # Encoder MLP with the input concat folded into two matmuls:
    # cat([y, pos], -1) @ W1 == y @ W1[:y_in] + pos @ W1[y_in:]
    h = (jnp.dot(y_f32.astype(jnp.bfloat16), w1y_bf16,
                 preferred_element_type=jnp.float32)
         + jnp.dot(pos_f32.astype(jnp.bfloat16), w1p_bf16,
                   preferred_element_type=jnp.float32)
         + b1_f32)
    h = jnp.maximum(h, 0.0)
    return jnp.dot(h.astype(jnp.bfloat16), w2_bf16,
                   preferred_element_type=jnp.float32) + b2_f32


def _gin_block(x, adj_bf16, eps, w1, b1, w2, b2, *, ib_e, ib_n):
    # One GINConv + ReLU + residual + optional node-mean centering.
    agg = jnp.dot(adj_bf16, x.astype(jnp.bfloat16),
                  preferred_element_type=jnp.float32)          # sum_j x_j
    if ib_e:
        agg = agg - jnp.mean(agg, axis=0, keepdims=True)
    h = agg + (1.0 + eps) * x
    h = _mlp(h, w1, b1, w2, b2)
    x = x + jnp.maximum(h, 0.0)                                # x = x + relu(conv(x))
    if ib_n:
        x = x - jnp.mean(x, axis=0, keepdims=True)
    return x


def _knn_interpolate(x, poslT, posh, *, k):
    # PyG knn_interpolate: inverse-squared-distance weighting over k NN.
    n = poslT.shape[1]
    d2 = (jnp.sum(posh * posh, axis=1, keepdims=True)
          + jnp.sum(poslT * poslT, axis=0, keepdims=True)
          - 2.0 * jnp.dot(posh, poslT, preferred_element_type=jnp.float32))
    d2 = jnp.maximum(d2, 0.0)                                   # (M, N)

    inv_d2 = pl.reciprocal(jnp.maximum(d2, 1e-16), approx=True)  # EUP

    # Packed orderable key: non-negative f32 bit patterns order like int32, so
    # clearing the low ceil(log2(n)) mantissa bits and OR-ing the column index
    # gives a per-row-unique key whose int ordering is (quantized d2, column)
    # lexicographic.  One jnp.min per pass replaces two reductions per pass.
    # Near-exact ties (relative distance diff < n * 2^-23) are broken by column,
    # matching the exact-tie behavior of the reference implementation.
    col = jax.lax.broadcasted_iota(jnp.int32, d2.shape, 1)
    bits = max(1, int(math.ceil(math.log2(max(n, 2)))))
    low_mask = (1 << bits) - 1
    key = jnp.bitwise_or(
        jnp.bitwise_and(pltpu.bitcast(d2, jnp.int32), jnp.int32(~low_mask)),
        col)
    sentinel = jnp.int32(jnp.iinfo(jnp.int32).max)

    w = jnp.zeros_like(d2)
    for _ in range(k):
        m = jnp.min(key, axis=1, keepdims=True)   # one XLU reduction per pass
        onehot = key == m                         # unique per row by construction
        w = jnp.where(onehot, inv_d2, w)
        key = jnp.where(onehot, sentinel, key)

    num = jnp.dot(w, x, preferred_element_type=jnp.float32)      # (M, F)
    den = jnp.sum(w, axis=1, keepdims=True)
    return num * pl.reciprocal(den, approx=True)


# ---------------------------------------------------------------------------
# The fused kernel: encoder -> conv1 stack -> knn_interpolate -> conv2 stack
# ---------------------------------------------------------------------------
def gin_shared_kernel(
        eps1_ref, eps2_ref,                        # SMEM (depth,)
        y_ref, posl_ref,                           # (Nl, Fy), (Nl, D)   f32
        ew1y_ref, ew1p_ref, eb1_ref, ew2_ref, eb2_ref,   # encoder (bf16 W, f32 b)
        adj_l_ref,                                 # (Nl, Nl)       bf16
        c1w1_ref, c1b1_ref, c1w2_ref, c1b2_ref,    # (depth, H, H) / (depth, 1, H)
        poslT_ref, posh_ref,                       # (D, Nl), (Nh, D)  f32
        adj_h_ref,                                 # (Nh, Nh)       bf16
        c2w1_ref, c2b1_ref, c2w2_ref, c2b2_ref,
        o_ref,                                     # (Nh, H)        f32
        *, depth, k, ib_e, ib_n):
    # Encoder MLP (input concat folded into split first-layer weights).
    x = _encoder(y_ref[...], posl_ref[...],
                 ew1y_ref[...], ew1p_ref[...], eb1_ref[...],
                 ew2_ref[...], eb2_ref[...])

    # Low-resolution GIN stack (statically unrolled; depth is small, weights
    # indexed with static slabs of the stacked (depth, ...) refs).
    adj_l = adj_l_ref[...]
    for d in range(depth):
        x = _gin_block(x, adj_l, eps1_ref[d],
                       c1w1_ref[d], c1b1_ref[d], c1w2_ref[d], c1b2_ref[d],
                       ib_e=ib_e, ib_n=ib_n)

    # knn interpolation: low-res nodes -> high-res nodes.
    x = _knn_interpolate(x, poslT_ref[...], posh_ref[...], k=k)

    # High-resolution GIN stack.
    adj_h = adj_h_ref[...]
    for d in range(depth):
        x = _gin_block(x, adj_h, eps2_ref[d],
                       c2w1_ref[d], c2b1_ref[d], c2w2_ref[d], c2b2_ref[d],
                       ib_e=ib_e, ib_n=ib_n)

    o_ref[...] = x


# ---------------------------------------------------------------------------
# Wrapper: one pallas_call for the whole forward (everything fits in VMEM)
# ---------------------------------------------------------------------------
@functools.partial(jax.jit, static_argnames=("ib_n", "ib_e", "k"))
def gin_shared_forward(params, l_pos1, l_y1, adj_l, h_pos1, adj_h,
                       *, ib_n, ib_e, k=3):
    depth = params["conv1"]["w1"].shape[0]
    hidden = params["conv1"]["w1"].shape[-1]
    y_in = l_y1.shape[-1]
    n_high = h_pos1.shape[0]

    bf = lambda a: a.astype(jnp.bfloat16)
    # Split encoder W1 into y-rows / pos-rows so the kernel can skip the concat.
    enc_w1y = bf(params["encoder"]["w1"][:y_in])
    enc_w1p = bf(params["encoder"]["w1"][y_in:])

    kernel = functools.partial(gin_shared_kernel, depth=depth, k=k,
                               ib_e=ib_e, ib_n=ib_n)
    return pl.pallas_call(
        kernel,
        out_shape=jax.ShapeDtypeStruct((n_high, hidden), jnp.float32),
        in_specs=[SMEM, SMEM] + [VMEM] * 19,
        out_specs=VMEM,
    )(
        params["conv1"]["eps"], params["conv2"]["eps"],
        l_y1, l_pos1,
        enc_w1y, enc_w1p, params["encoder"]["b1"],
        bf(params["encoder"]["w2"]), params["encoder"]["b2"],
        bf(adj_l),
        bf(params["conv1"]["w1"]), params["conv1"]["b1"],
        bf(params["conv1"]["w2"]), params["conv1"]["b2"],
        jnp.transpose(l_pos1), h_pos1,
        bf(adj_h),
        bf(params["conv2"]["w1"]), params["conv2"]["b1"],
        bf(params["conv2"]["w2"]), params["conv2"]["b2"],
    )


# ---------------------------------------------------------------------------
# Parameter init (deterministic, PyTorch-Linear-style uniform), stacked per layer
# ---------------------------------------------------------------------------
def init_linear(key, fan_in, fan_out):
    kw, kb = jax.random.split(key)
    bound = 1.0 / float(fan_in) ** 0.5
    w = jax.random.uniform(kw, (fan_in, fan_out), jnp.float32, -bound, bound)
    b = jax.random.uniform(kb, (1, fan_out), jnp.float32, -bound, bound)
    return w, b


def init_mlp(key, din, dh, dout):
    k1, k2 = jax.random.split(key)
    w1, b1 = init_linear(k1, din, dh)
    w2, b2 = init_linear(k2, dh, dout)
    return {"w1": w1, "b1": b1, "w2": w2, "b2": b2}


def init_conv_stack(key, depth, hidden):
    keys = jax.random.split(key, depth)
    mlps = [init_mlp(kk, hidden, hidden, hidden) for kk in keys]
    return {
        "eps": jnp.zeros((depth,), jnp.float32),   # initial_eps = 0.0
        "w1": jnp.stack([m["w1"] for m in mlps]),
        "b1": jnp.stack([m["b1"] for m in mlps]),
        "w2": jnp.stack([m["w2"] for m in mlps]),
        "b2": jnp.stack([m["b2"] for m in mlps]),
    }


def init_gin_shared(key, depth, y_in, pos_in, hidden):
    k_enc, k1, k2 = jax.random.split(key, 3)
    return {
        "encoder": init_mlp(k_enc, y_in + pos_in, hidden, hidden),
        "conv1": init_conv_stack(k1, depth, hidden),
        "conv2": init_conv_stack(k2, depth, hidden),
    }


# ---------------------------------------------------------------------------
# Glue: edge_index (2, E) -> dense adjacency with 'add' aggregation
# (static graph topology: built once, outside the jitted forward)
# ---------------------------------------------------------------------------
def edges_to_dense(edge_index, n):
    adj = jnp.zeros((n, n), jnp.float32)
    # out[i] = sum over edges j->i of x[j]  =>  A[i, j] += 1
    return adj.at[edge_index[1], edge_index[0]].add(1.0)


# ---------------------------------------------------------------------------
if __name__ == "__main__":
    depth = 2
    y_input_size = 4
    pos_input_size = 3
    hidden_size = 32
    n_low, n_high = 16, 32
    e_low, e_high = 48, 96

    key = jax.random.PRNGKey(0)
    k_par, k_lp, k_ly, k_le, k_hp, k_he = jax.random.split(key, 6)

    params = init_gin_shared(k_par, depth, y_input_size, pos_input_size, hidden_size)

    l_pos1 = jax.random.normal(k_lp, (n_low, pos_input_size), jnp.float32)
    l_y1 = jax.random.normal(k_ly, (n_low, y_input_size), jnp.float32)
    l_e1 = jax.random.randint(k_le, (2, e_low), 0, n_low, jnp.int32)
    h_pos1 = jax.random.normal(k_hp, (n_high, pos_input_size), jnp.float32)
    h_e1 = jax.random.randint(k_he, (2, e_high), 0, n_high, jnp.int32)

    # Hoisted graph prep (topology is static across forwards).
    adj_l = edges_to_dense(l_e1, n_low)
    adj_h = edges_to_dense(h_e1, n_high)

    out = gin_shared_forward(params, l_pos1, l_y1, adj_l, h_pos1, adj_h,
                             ib_n=True, ib_e=True)
    out = jax.block_until_ready(out)
    assert out.shape == (n_high, hidden_size), out.shape
    assert bool(jnp.all(jnp.isfinite(out)))
    print("KERNEL_OK")
</pallas_src>

<mosaic_0001>
module attributes {stable_mosaic.version = 11 : i64} {
  func.func @gin_shared_kernel(%arg0: memref<2xf32, #tpu.memory_space<smem>>, %arg1: memref<2xf32, #tpu.memory_space<smem>>, %arg2: memref<16x4xf32, #tpu.memory_space<vmem>>, %arg3: memref<16x3xf32, #tpu.memory_space<vmem>>, %arg4: memref<4x32xbf16, #tpu.memory_space<vmem>>, %arg5: memref<3x32xbf16, #tpu.memory_space<vmem>>, %arg6: memref<1x32xf32, #tpu.memory_space<vmem>>, %arg7: memref<32x32xbf16, #tpu.memory_space<vmem>>, %arg8: memref<1x32xf32, #tpu.memory_space<vmem>>, %arg9: memref<16x16xbf16, #tpu.memory_space<vmem>>, %arg10: memref<2x32x32xbf16, #tpu.memory_space<vmem>>, %arg11: memref<2x1x32xf32, #tpu.memory_space<vmem>>, %arg12: memref<2x32x32xbf16, #tpu.memory_space<vmem>>, %arg13: memref<2x1x32xf32, #tpu.memory_space<vmem>>, %arg14: memref<3x16xf32, #tpu.memory_space<vmem>>, %arg15: memref<32x3xf32, #tpu.memory_space<vmem>>, %arg16: memref<32x32xbf16, #tpu.memory_space<vmem>>, %arg17: memref<2x32x32xbf16, #tpu.memory_space<vmem>>, %arg18: memref<2x1x32xf32, #tpu.memory_space<vmem>>, %arg19: memref<2x32x32xbf16, #tpu.memory_space<vmem>>, %arg20: memref<2x1x32xf32, #tpu.memory_space<vmem>>, %arg21: memref<32x32xf32, #tpu.memory_space<vmem>>) attributes {dimension_semantics = [], scalar_prefetch = 0 : i64, scratch_operands = 0 : i64, tpu.core_type = #tpu.core_type<tc>} {
    %c0 = arith.constant 0 : index
    %c0_0 = arith.constant 0 : index
    %0 = vector.load %arg2[%c0, %c0_0] : memref<16x4xf32, #tpu.memory_space<vmem>>, vector<16x4xf32>
    %c0_1 = arith.constant 0 : index
    %c0_2 = arith.constant 0 : index
    %1 = vector.load %arg3[%c0_1, %c0_2] : memref<16x3xf32, #tpu.memory_space<vmem>>, vector<16x3xf32>
    %c0_3 = arith.constant 0 : index
    %c0_4 = arith.constant 0 : index
    %2 = vector.load %arg4[%c0_3, %c0_4] : memref<4x32xbf16, #tpu.memory_space<vmem>>, vector<4x32xbf16>
    %c0_5 = arith.constant 0 : index
    %c0_6 = arith.constant 0 : index
    %3 = vector.load %arg5[%c0_5, %c0_6] : memref<3x32xbf16, #tpu.memory_space<vmem>>, vector<3x32xbf16>
    %c0_7 = arith.constant 0 : index
    %c0_8 = arith.constant 0 : index
    %4 = vector.load %arg6[%c0_7, %c0_8] : memref<1x32xf32, #tpu.memory_space<vmem>>, vector<1x32xf32>
    %c0_9 = arith.constant 0 : index
    %c0_10 = arith.constant 0 : index
    %5 = vector.load %arg7[%c0_9, %c0_10] : memref<32x32xbf16, #tpu.memory_space<vmem>>, vector<32x32xbf16>
    %c0_11 = arith.constant 0 : index
    %c0_12 = arith.constant 0 : index
    %6 = vector.load %arg8[%c0_11, %c0_12] : memref<1x32xf32, #tpu.memory_space<vmem>>, vector<1x32xf32>
    %7 = arith.truncf %0 : vector<16x4xf32> to vector<16x4xbf16>
    %cst = arith.constant dense<0.000000e+00> : vector<16x32xf32>
    %8 = tpu.matmul %7, %2, %cst {dimension_numbers = #tpu.dot_dimension_numbers<[1], [0], [0], [1], [0, 0, 1, 1], [], []>} : vector<16x4xbf16>, vector<4x32xbf16>, vector<16x32xf32> -> vector<16x32xf32>
    %9 = arith.truncf %1 : vector<16x3xf32> to vector<16x3xbf16>
    %cst_13 = arith.constant dense<0.000000e+00> : vector<16x32xf32>
    %10 = tpu.matmul %9, %3, %cst_13 {dimension_numbers = #tpu.dot_dimension_numbers<[1], [0], [0], [1], [0, 0, 1, 1], [], []>} : vector<16x3xbf16>, vector<3x32xbf16>, vector<16x32xf32> -> vector<16x32xf32>
    %11 = arith.addf %8, %10 : vector<16x32xf32>
    %12 = vector.broadcast %4 : vector<1x32xf32> to vector<16x32xf32>
    %13 = arith.addf %11, %12 : vector<16x32xf32>
    %cst_14 = arith.constant 0.000000e+00 : f32
    %14 = vector.broadcast %cst_14 : f32 to vector<16x32xf32>
    %15 = arith.maximumf %13, %14 : vector<16x32xf32>
    %16 = arith.truncf %15 : vector<16x32xf32> to vector<16x32xbf16>
    %cst_15 = arith.constant dense<0.000000e+00> : vector<16x32xf32>
    %17 = tpu.matmul %16, %5, %cst_15 {dimension_numbers = #tpu.dot_dimension_numbers<[1], [0], [0], [1], [0, 0, 1, 1], [], []>} : vector<16x32xbf16>, vector<32x32xbf16>, vector<16x32xf32> -> vector<16x32xf32>
    %18 = vector.broadcast %6 : vector<1x32xf32> to vector<16x32xf32>
    %19 = arith.addf %17, %18 : vector<16x32xf32>
    %c0_16 = arith.constant 0 : index
    %c0_17 = arith.constant 0 : index
    %20 = vector.load %arg9[%c0_16, %c0_17] : memref<16x16xbf16, #tpu.memory_space<vmem>>, vector<16x16xbf16>
    %c0_18 = arith.constant 0 : index
    %21 = memref.load %arg0[%c0_18] : memref<2xf32, #tpu.memory_space<smem>>
    %c0_19 = arith.constant 0 : index
    %c0_20 = arith.constant 0 : index
    %c0_21 = arith.constant 0 : index
    %22 = vector.load %arg10[%c0_19, %c0_20, %c0_21] : memref<2x32x32xbf16, #tpu.memory_space<vmem>>, vector<1x32x32xbf16>
    %23 = vector.shape_cast %22 : vector<1x32x32xbf16> to vector<32x32xbf16>
    %c0_22 = arith.constant 0 : index
    %c0_23 = arith.constant 0 : index
    %c0_24 = arith.constant 0 : index
    %24 = vector.load %arg11[%c0_22, %c0_23, %c0_24] : memref<2x1x32xf32, #tpu.memory_space<vmem>>, vector<1x1x32xf32>
    %25 = vector.shape_cast %24 : vector<1x1x32xf32> to vector<1x32xf32>
    %c0_25 = arith.constant 0 : index
    %c0_26 = arith.constant 0 : index
    %c0_27 = arith.constant 0 : index
    %26 = vector.load %arg12[%c0_25, %c0_26, %c0_27] : memref<2x32x32xbf16, #tpu.memory_space<vmem>>, vector<1x32x32xbf16>
    %27 = vector.shape_cast %26 : vector<1x32x32xbf16> to vector<32x32xbf16>
    %c0_28 = arith.constant 0 : index
    %c0_29 = arith.constant 0 : index
    %c0_30 = arith.constant 0 : index
    %28 = vector.load %arg13[%c0_28, %c0_29, %c0_30] : memref<2x1x32xf32, #tpu.memory_space<vmem>>, vector<1x1x32xf32>
    %29 = vector.shape_cast %28 : vector<1x1x32xf32> to vector<1x32xf32>
    %30 = arith.truncf %19 : vector<16x32xf32> to vector<16x32xbf16>
    %cst_31 = arith.constant dense<0.000000e+00> : vector<16x32xf32>
    %31 = tpu.matmul %20, %30, %cst_31 {dimension_numbers = #tpu.dot_dimension_numbers<[1], [0], [0], [1], [0, 0, 1, 1], [], []>} : vector<16x16xbf16>, vector<16x32xbf16>, vector<16x32xf32> -> vector<16x32xf32>
    %cst_32 = arith.constant dense<0.000000e+00> : vector<32xf32>
    %32 = vector.multi_reduction <add>, %31, %cst_32 [0] : vector<16x32xf32> to vector<32xf32>
    %33 = vector.shape_cast %32 : vector<32xf32> to vector<1x32xf32>
    %cst_33 = arith.constant 1.600000e+01 : f32
    %34 = vector.broadcast %cst_33 : f32 to vector<1x32xf32>
    %35 = arith.divf %33, %34 : vector<1x32xf32>
    %36 = vector.broadcast %35 : vector<1x32xf32> to vector<16x32xf32>
    %37 = arith.subf %31, %36 : vector<16x32xf32>
    %cst_34 = arith.constant 1.000000e+00 : f32
    %38 = arith.addf %cst_34, %21 : f32
    %39 = vector.broadcast %38 : f32 to vector<16x32xf32>
    %40 = arith.mulf %39, %19 : vector<16x32xf32>
    %41 = arith.addf %37, %40 : vector<16x32xf32>
    %42 = arith.truncf %41 : vector<16x32xf32> to vector<16x32xbf16>
    %cst_35 = arith.constant dense<0.000000e+00> : vector<16x32xf32>
    %43 = tpu.matmul %42, %23, %cst_35 {dimension_numbers = #tpu.dot_dimension_numbers<[1], [0], [0], [1], [0, 0, 1, 1], [], []>} : vector<16x32xbf16>, vector<32x32xbf16>, vector<16x32xf32> -> vector<16x32xf32>
    %44 = vector.broadcast %25 : vector<1x32xf32> to vector<16x32xf32>
    %45 = arith.addf %43, %44 : vector<16x32xf32>
    %cst_36 = arith.constant 0.000000e+00 : f32
    %46 = vector.broadcast %cst_36 : f32 to vector<16x32xf32>
    %47 = arith.maximumf %45, %46 : vector<16x32xf32>
    %48 = arith.truncf %47 : vector<16x32xf32> to vector<16x32xbf16>
    %cst_37 = arith.constant dense<0.000000e+00> : vector<16x32xf32>
    %49 = tpu.matmul %48, %27, %cst_37 {dimension_numbers = #tpu.dot_dimension_numbers<[1], [0], [0], [1], [0, 0, 1, 1], [], []>} : vector<16x32xbf16>, vector<32x32xbf16>, vector<16x32xf32> -> vector<16x32xf32>
    %50 = vector.broadcast %29 : vector<1x32xf32> to vector<16x32xf32>
    %51 = arith.addf %49, %50 : vector<16x32xf32>
    %cst_38 = arith.constant 0.000000e+00 : f32
    %52 = vector.broadcast %cst_38 : f32 to vector<16x32xf32>
    %53 = arith.maximumf %51, %52 : vector<16x32xf32>
    %54 = arith.addf %19, %53 : vector<16x32xf32>
    %cst_39 = arith.constant dense<0.000000e+00> : vector<32xf32>
    %55 = vector.multi_reduction <add>, %54, %cst_39 [0] : vector<16x32xf32> to vector<32xf32>
    %56 = vector.shape_cast %55 : vector<32xf32> to vector<1x32xf32>
    %cst_40 = arith.constant 1.600000e+01 : f32
    %57 = vector.broadcast %cst_40 : f32 to vector<1x32xf32>
    %58 = arith.divf %56, %57 : vector<1x32xf32>
    %59 = vector.broadcast %58 : vector<1x32xf32> to vector<16x32xf32>
    %60 = arith.subf %54, %59 : vector<16x32xf32>
    %c1 = arith.constant 1 : index
    %61 = memref.load %arg0[%c1] : memref<2xf32, #tpu.memory_space<smem>>
    %c1_41 = arith.constant 1 : index
    %c0_42 = arith.constant 0 : index
    %c0_43 = arith.constant 0 : index
    %62 = vector.load %arg10[%c1_41, %c0_42, %c0_43] : memref<2x32x32xbf16, #tpu.memory_space<vmem>>, vector<1x32x32xbf16>
    %63 = vector.shape_cast %62 : vector<1x32x32xbf16> to vector<32x32xbf16>
    %c1_44 = arith.constant 1 : index
    %c0_45 = arith.constant 0 : index
    %c0_46 = arith.constant 0 : index
    %64 = vector.load %arg11[%c1_44, %c0_45, %c0_46] : memref<2x1x32xf32, #tpu.memory_space<vmem>>, vector<1x1x32xf32>
    %65 = vector.shape_cast %64 : vector<1x1x32xf32> to vector<1x32xf32>
    %c1_47 = arith.constant 1 : index
    %c0_48 = arith.constant 0 : index
    %c0_49 = arith.constant 0 : index
    %66 = vector.load %arg12[%c1_47, %c0_48, %c0_49] : memref<2x32x32xbf16, #tpu.memory_space<vmem>>, vector<1x32x32xbf16>
    %67 = vector.shape_cast %66 : vector<1x32x32xbf16> to vector<32x32xbf16>
    %c1_50 = arith.constant 1 : index
    %c0_51 = arith.constant 0 : index
    %c0_52 = arith.constant 0 : index
    %68 = vector.load %arg13[%c1_50, %c0_51, %c0_52] : memref<2x1x32xf32, #tpu.memory_space<vmem>>, vector<1x1x32xf32>
    %69 = vector.shape_cast %68 : vector<1x1x32xf32> to vector<1x32xf32>
    %70 = arith.truncf %60 : vector<16x32xf32> to vector<16x32xbf16>
    %cst_53 = arith.constant dense<0.000000e+00> : vector<16x32xf32>
    %71 = tpu.matmul %20, %70, %cst_53 {dimension_numbers = #tpu.dot_dimension_numbers<[1], [0], [0], [1], [0, 0, 1, 1], [], []>} : vector<16x16xbf16>, vector<16x32xbf16>, vector<16x32xf32> -> vector<16x32xf32>
    %cst_54 = arith.constant dense<0.000000e+00> : vector<32xf32>
    %72 = vector.multi_reduction <add>, %71, %cst_54 [0] : vector<16x32xf32> to vector<32xf32>
    %73 = vector.shape_cast %72 : vector<32xf32> to vector<1x32xf32>
    %cst_55 = arith.constant 1.600000e+01 : f32
    %74 = vector.broadcast %cst_55 : f32 to vector<1x32xf32>
    %75 = arith.divf %73, %74 : vector<1x32xf32>
    %76 = vector.broadcast %75 : vector<1x32xf32> to vector<16x32xf32>
    %77 = arith.subf %71, %76 : vector<16x32xf32>
    %cst_56 = arith.constant 1.000000e+00 : f32
    %78 = arith.addf %cst_56, %61 : f32
    %79 = vector.broadcast %78 : f32 to vector<16x32xf32>
    %80 = arith.mulf %79, %60 : vector<16x32xf32>
    %81 = arith.addf %77, %80 : vector<16x32xf32>
    %82 = arith.truncf %81 : vector<16x32xf32> to vector<16x32xbf16>
    %cst_57 = arith.constant dense<0.000000e+00> : vector<16x32xf32>
    %83 = tpu.matmul %82, %63, %cst_57 {dimension_numbers = #tpu.dot_dimension_numbers<[1], [0], [0], [1], [0, 0, 1, 1], [], []>} : vector<16x32xbf16>, vector<32x32xbf16>, vector<16x32xf32> -> vector<16x32xf32>
    %84 = vector.broadcast %65 : vector<1x32xf32> to vector<16x32xf32>
    %85 = arith.addf %83, %84 : vector<16x32xf32>
    %cst_58 = arith.constant 0.000000e+00 : f32
    %86 = vector.broadcast %cst_58 : f32 to vector<16x32xf32>
    %87 = arith.maximumf %85, %86 : vector<16x32xf32>
    %88 = arith.truncf %87 : vector<16x32xf32> to vector<16x32xbf16>
    %cst_59 = arith.constant dense<0.000000e+00> : vector<16x32xf32>
    %89 = tpu.matmul %88, %67, %cst_59 {dimension_numbers = #tpu.dot_dimension_numbers<[1], [0], [0], [1], [0, 0, 1, 1], [], []>} : vector<16x32xbf16>, vector<32x32xbf16>, vector<16x32xf32> -> vector<16x32xf32>
    %90 = vector.broadcast %69 : vector<1x32xf32> to vector<16x32xf32>
    %91 = arith.addf %89, %90 : vector<16x32xf32>
    %cst_60 = arith.constant 0.000000e+00 : f32
    %92 = vector.broadcast %cst_60 : f32 to vector<16x32xf32>
    %93 = arith.maximumf %91, %92 : vector<16x32xf32>
    %94 = arith.addf %60, %93 : vector<16x32xf32>
    %cst_61 = arith.constant dense<0.000000e+00> : vector<32xf32>
    %95 = vector.multi_reduction <add>, %94, %cst_61 [0] : vector<16x32xf32> to vector<32xf32>
    %96 = vector.shape_cast %95 : vector<32xf32> to vector<1x32xf32>
    %cst_62 = arith.constant 1.600000e+01 : f32
    %97 = vector.broadcast %cst_62 : f32 to vector<1x32xf32>
    %98 = arith.divf %96, %97 : vector<1x32xf32>
    %99 = vector.broadcast %98 : vector<1x32xf32> to vector<16x32xf32>
    %100 = arith.subf %94, %99 : vector<16x32xf32>
    %c0_63 = arith.constant 0 : index
    %c0_64 = arith.constant 0 : index
    %101 = vector.load %arg14[%c0_63, %c0_64] : memref<3x16xf32, #tpu.memory_space<vmem>>, vector<3x16xf32>
    %c0_65 = arith.constant 0 : index
    %c0_66 = arith.constant 0 : index
    %102 = vector.load %arg15[%c0_65, %c0_66] : memref<32x3xf32, #tpu.memory_space<vmem>>, vector<32x3xf32>
    %103 = arith.mulf %102, %102 : vector<32x3xf32>
    %cst_67 = arith.constant dense<0.000000e+00> : vector<32xf32>
    %104 = vector.multi_reduction <add>, %103, %cst_67 [1] : vector<32x3xf32> to vector<32xf32>
    %105 = vector.shape_cast %104 : vector<32xf32> to vector<32x1xf32>
    %106 = arith.mulf %101, %101 : vector<3x16xf32>
    %cst_68 = arith.constant dense<0.000000e+00> : vector<16xf32>
    %107 = vector.multi_reduction <add>, %106, %cst_68 [0] : vector<3x16xf32> to vector<16xf32>
    %108 = vector.shape_cast %107 : vector<16xf32> to vector<1x16xf32>
    %109 = vector.broadcast %105 : vector<32x1xf32> to vector<32x16xf32>
    %110 = vector.broadcast %108 : vector<1x16xf32> to vector<32x16xf32>
    %111 = arith.addf %109, %110 : vector<32x16xf32>
    %cst_69 = arith.constant dense<0.000000e+00> : vector<32x16xf32>
    %112 = tpu.matmul %102, %101, %cst_69 {dimension_numbers = #tpu.dot_dimension_numbers<[1], [0], [0], [1], [0, 0, 1, 1], [], []>} : vector<32x3xf32>, vector<3x16xf32>, vector<32x16xf32> -> vector<32x16xf32>
    %cst_70 = arith.constant 2.000000e+00 : f32
    %113 = vector.broadcast %cst_70 : f32 to vector<32x16xf32>
    %114 = arith.mulf %113, %112 : vector<32x16xf32>
    %115 = arith.subf %111, %114 : vector<32x16xf32>
    %cst_71 = arith.constant 0.000000e+00 : f32
    %116 = vector.broadcast %cst_71 : f32 to vector<32x16xf32>
    %117 = arith.maximumf %115, %116 : vector<32x16xf32>
    %cst_72 = arith.constant 1.000000e-16 : f32
    %118 = vector.broadcast %cst_72 : f32 to vector<32x16xf32>
    %119 = arith.maximumf %117, %118 : vector<32x16xf32>
    %120 = tpu.reciprocal %119 {approx = true} : vector<32x16xf32> -> vector<32x16xf32>
    %121 = tpu.iota {dimensions = array<i32: 1>} : vector<32x16xi32>
    %122 = tpu.bitcast %117 : vector<32x16xf32> -> vector<32x16xi32>
    %c-16_i32 = arith.constant -16 : i32
    %123 = vector.broadcast %c-16_i32 : i32 to vector<32x16xi32>
    %124 = arith.andi %122, %123 : vector<32x16xi32>
    %125 = arith.ori %124, %121 : vector<32x16xi32>
    %cst_73 = arith.constant 0.000000e+00 : f32
    %126 = vector.broadcast %cst_73 : f32 to vector<32x16xf32>
    %cst_74 = arith.constant dense<2147483647> : vector<32xi32>
    %127 = vector.multi_reduction <minsi>, %125, %cst_74 [1] : vector<32x16xi32> to vector<32xi32>
    %128 = vector.shape_cast %127 : vector<32xi32> to vector<32x1xi32>
    %129 = vector.broadcast %128 : vector<32x1xi32> to vector<32x16xi32>
    %130 = arith.cmpi eq, %125, %129 : vector<32x16xi32>
    %131 = arith.select %130, %120, %126 : vector<32x16xi1>, vector<32x16xf32>
    %c2147483647_i32 = arith.constant 2147483647 : i32
    %132 = vector.broadcast %c2147483647_i32 : i32 to vector<32x16xi32>
    %133 = arith.select %130, %132, %125 : vector<32x16xi1>, vector<32x16xi32>
    %cst_75 = arith.constant dense<2147483647> : vector<32xi32>
    %134 = vector.multi_reduction <minsi>, %133, %cst_75 [1] : vector<32x16xi32> to vector<32xi32>
    %135 = vector.shape_cast %134 : vector<32xi32> to vector<32x1xi32>
    %136 = vector.broadcast %135 : vector<32x1xi32> to vector<32x16xi32>
    %137 = arith.cmpi eq, %133, %136 : vector<32x16xi32>
    %138 = arith.select %137, %120, %131 : vector<32x16xi1>, vector<32x16xf32>
    %c2147483647_i32_76 = arith.constant 2147483647 : i32
    %139 = vector.broadcast %c2147483647_i32_76 : i32 to vector<32x16xi32>
    %140 = arith.select %137, %139, %133 : vector<32x16xi1>, vector<32x16xi32>
    %cst_77 = arith.constant dense<2147483647> : vector<32xi32>
    %141 = vector.multi_reduction <minsi>, %140, %cst_77 [1] : vector<32x16xi32> to vector<32xi32>
    %142 = vector.shape_cast %141 : vector<32xi32> to vector<32x1xi32>
    %143 = vector.broadcast %142 : vector<32x1xi32> to vector<32x16xi32>
    %144 = arith.cmpi eq, %140, %143 : vector<32x16xi32>
    %145 = arith.select %144, %120, %138 : vector<32x16xi1>, vector<32x16xf32>
    %cst_78 = arith.constant dense<0.000000e+00> : vector<32x32xf32>
    %146 = tpu.matmul %145, %100, %cst_78 {dimension_numbers = #tpu.dot_dimension_numbers<[1], [0], [0], [1], [0, 0, 1, 1], [], []>} : vector<32x16xf32>, vector<16x32xf32>, vector<32x32xf32> -> vector<32x32xf32>
    %cst_79 = arith.constant dense<0.000000e+00> : vector<32xf32>
    %147 = vector.multi_reduction <add>, %145, %cst_79 [1] : vector<32x16xf32> to vector<32xf32>
    %148 = vector.shape_cast %147 : vector<32xf32> to vector<32x1xf32>
    %149 = tpu.reciprocal %148 {approx = true} : vector<32x1xf32> -> vector<32x1xf32>
    %150 = vector.broadcast %149 : vector<32x1xf32> to vector<32x32xf32>
    %151 = arith.mulf %146, %150 : vector<32x32xf32>
    %c0_80 = arith.constant 0 : index
    %c0_81 = arith.constant 0 : index
    %152 = vector.load %arg16[%c0_80, %c0_81] : memref<32x32xbf16, #tpu.memory_space<vmem>>, vector<32x32xbf16>
    %c0_82 = arith.constant 0 : index
    %153 = memref.load %arg1[%c0_82] : memref<2xf32, #tpu.memory_space<smem>>
    %c0_83 = arith.constant 0 : index
    %c0_84 = arith.constant 0 : index
    %c0_85 = arith.constant 0 : index
    %154 = vector.load %arg17[%c0_83, %c0_84, %c0_85] : memref<2x32x32xbf16, #tpu.memory_space<vmem>>, vector<1x32x32xbf16>
    %155 = vector.shape_cast %154 : vector<1x32x32xbf16> to vector<32x32xbf16>
    %c0_86 = arith.constant 0 : index
    %c0_87 = arith.constant 0 : index
    %c0_88 = arith.constant 0 : index
    %156 = vector.load %arg18[%c0_86, %c0_87, %c0_88] : memref<2x1x32xf32, #tpu.memory_space<vmem>>, vector<1x1x32xf32>
    %157 = vector.shape_cast %156 : vector<1x1x32xf32> to vector<1x32xf32>
    %c0_89 = arith.constant 0 : index
    %c0_90 = arith.constant 0 : index
    %c0_91 = arith.constant 0 : index
    %158 = vector.load %arg19[%c0_89, %c0_90, %c0_91] : memref<2x32x32xbf16, #tpu.memory_space<vmem>>, vector<1x32x32xbf16>
    %159 = vector.shape_cast %158 : vector<1x32x32xbf16> to vector<32x32xbf16>
    %c0_92 = arith.constant 0 : index
    %c0_93 = arith.constant 0 : index
    %c0_94 = arith.constant 0 : index
    %160 = vector.load %arg20[%c0_92, %c0_93, %c0_94] : memref<2x1x32xf32, #tpu.memory_space<vmem>>, vector<1x1x32xf32>
    %161 = vector.shape_cast %160 : vector<1x1x32xf32> to vector<1x32xf32>
    %162 = arith.truncf %151 : vector<32x32xf32> to vector<32x32xbf16>
    %cst_95 = arith.constant dense<0.000000e+00> : vector<32x32xf32>
    %163 = tpu.matmul %152, %162, %cst_95 {dimension_numbers = #tpu.dot_dimension_numbers<[1], [0], [0], [1], [0, 0, 1, 1], [], []>} : vector<32x32xbf16>, vector<32x32xbf16>, vector<32x32xf32> -> vector<32x32xf32>
    %cst_96 = arith.constant dense<0.000000e+00> : vector<32xf32>
    %164 = vector.multi_reduction <add>, %163, %cst_96 [0] : vector<32x32xf32> to vector<32xf32>
    %165 = vector.shape_cast %164 : vector<32xf32> to vector<1x32xf32>
    %cst_97 = arith.constant 3.200000e+01 : f32
    %166 = vector.broadcast %cst_97 : f32 to vector<1x32xf32>
    %167 = arith.divf %165, %166 : vector<1x32xf32>
    %168 = vector.broadcast %167 : vector<1x32xf32> to vector<32x32xf32>
    %169 = arith.subf %163, %168 : vector<32x32xf32>
    %cst_98 = arith.constant 1.000000e+00 : f32
    %170 = arith.addf %cst_98, %153 : f32
    %171 = vector.broadcast %170 : f32 to vector<32x32xf32>
    %172 = arith.mulf %171, %151 : vector<32x32xf32>
    %173 = arith.addf %169, %172 : vector<32x32xf32>
    %174 = arith.truncf %173 : vector<32x32xf32> to vector<32x32xbf16>
    %cst_99 = arith.constant dense<0.000000e+00> : vector<32x32xf32>
    %175 = tpu.matmul %174, %155, %cst_99 {dimension_numbers = #tpu.dot_dimension_numbers<[1], [0], [0], [1], [0, 0, 1, 1], [], []>} : vector<32x32xbf16>, vector<32x32xbf16>, vector<32x32xf32> -> vector<32x32xf32>
    %176 = vector.broadcast %157 : vector<1x32xf32> to vector<32x32xf32>
    %177 = arith.addf %175, %176 : vector<32x32xf32>
    %cst_100 = arith.constant 0.000000e+00 : f32
    %178 = vector.broadcast %cst_100 : f32 to vector<32x32xf32>
    %179 = arith.maximumf %177, %178 : vector<32x32xf32>
    %180 = arith.truncf %179 : vector<32x32xf32> to vector<32x32xbf16>
    %cst_101 = arith.constant dense<0.000000e+00> : vector<32x32xf32>
    %181 = tpu.matmul %180, %159, %cst_101 {dimension_numbers = #tpu.dot_dimension_numbers<[1], [0], [0], [1], [0, 0, 1, 1], [], []>} : vector<32x32xbf16>, vector<32x32xbf16>, vector<32x32xf32> -> vector<32x32xf32>
    %182 = vector.broadcast %161 : vector<1x32xf32> to vector<32x32xf32>
    %183 = arith.addf %181, %182 : vector<32x32xf32>
    %cst_102 = arith.constant 0.000000e+00 : f32
    %184 = vector.broadcast %cst_102 : f32 to vector<32x32xf32>
    %185 = arith.maximumf %183, %184 : vector<32x32xf32>
    %186 = arith.addf %151, %185 : vector<32x32xf32>
    %cst_103 = arith.constant dense<0.000000e+00> : vector<32xf32>
    %187 = vector.multi_reduction <add>, %186, %cst_103 [0] : vector<32x32xf32> to vector<32xf32>
    %188 = vector.shape_cast %187 : vector<32xf32> to vector<1x32xf32>
    %cst_104 = arith.constant 3.200000e+01 : f32
    %189 = vector.broadcast %cst_104 : f32 to vector<1x32xf32>
    %190 = arith.divf %188, %189 : vector<1x32xf32>
    %191 = vector.broadcast %190 : vector<1x32xf32> to vector<32x32xf32>
    %192 = arith.subf %186, %191 : vector<32x32xf32>
    %c1_105 = arith.constant 1 : index
    %193 = memref.load %arg1[%c1_105] : memref<2xf32, #tpu.memory_space<smem>>
    %c1_106 = arith.constant 1 : index
    %c0_107 = arith.constant 0 : index
    %c0_108 = arith.constant 0 : index
    %194 = vector.load %arg17[%c1_106, %c0_107, %c0_108] : memref<2x32x32xbf16, #tpu.memory_space<vmem>>, vector<1x32x32xbf16>
    %195 = vector.shape_cast %194 : vector<1x32x32xbf16> to vector<32x32xbf16>
    %c1_109 = arith.constant 1 : index
    %c0_110 = arith.constant 0 : index
    %c0_111 = arith.constant 0 : index
    %196 = vector.load %arg18[%c1_109, %c0_110, %c0_111] : memref<2x1x32xf32, #tpu.memory_space<vmem>>, vector<1x1x32xf32>
    %197 = vector.shape_cast %196 : vector<1x1x32xf32> to vector<1x32xf32>
    %c1_112 = arith.constant 1 : index
    %c0_113 = arith.constant 0 : index
    %c0_114 = arith.constant 0 : index
    %198 = vector.load %arg19[%c1_112, %c0_113, %c0_114] : memref<2x32x32xbf16, #tpu.memory_space<vmem>>, vector<1x32x32xbf16>
    %199 = vector.shape_cast %198 : vector<1x32x32xbf16> to vector<32x32xbf16>
    %c1_115 = arith.constant 1 : index
    %c0_116 = arith.constant 0 : index
    %c0_117 = arith.constant 0 : index
    %200 = vector.load %arg20[%c1_115, %c0_116, %c0_117] : memref<2x1x32xf32, #tpu.memory_space<vmem>>, vector<1x1x32xf32>
    %201 = vector.shape_cast %200 : vector<1x1x32xf32> to vector<1x32xf32>
    %202 = arith.truncf %192 : vector<32x32xf32> to vector<32x32xbf16>
    %cst_118 = arith.constant dense<0.000000e+00> : vector<32x32xf32>
    %203 = tpu.matmul %152, %202, %cst_118 {dimension_numbers = #tpu.dot_dimension_numbers<[1], [0], [0], [1], [0, 0, 1, 1], [], []>} : vector<32x32xbf16>, vector<32x32xbf16>, vector<32x32xf32> -> vector<32x32xf32>
    %cst_119 = arith.constant dense<0.000000e+00> : vector<32xf32>
    %204 = vector.multi_reduction <add>, %203, %cst_119 [0] : vector<32x32xf32> to vector<32xf32>
    %205 = vector.shape_cast %204 : vector<32xf32> to vector<1x32xf32>
    %cst_120 = arith.constant 3.200000e+01 : f32
    %206 = vector.broadcast %cst_120 : f32 to vector<1x32xf32>
    %207 = arith.divf %205, %206 : vector<1x32xf32>
    %208 = vector.broadcast %207 : vector<1x32xf32> to vector<32x32xf32>
    %209 = arith.subf %203, %208 : vector<32x32xf32>
    %cst_121 = arith.constant 1.000000e+00 : f32
    %210 = arith.addf %cst_121, %193 : f32
    %211 = vector.broadcast %210 : f32 to vector<32x32xf32>
    %212 = arith.mulf %211, %192 : vector<32x32xf32>
    %213 = arith.addf %209, %212 : vector<32x32xf32>
    %214 = arith.truncf %213 : vector<32x32xf32> to vector<32x32xbf16>
    %cst_122 = arith.constant dense<0.000000e+00> : vector<32x32xf32>
    %215 = tpu.matmul %214, %195, %cst_122 {dimension_numbers = #tpu.dot_dimension_numbers<[1], [0], [0], [1], [0, 0, 1, 1], [], []>} : vector<32x32xbf16>, vector<32x32xbf16>, vector<32x32xf32> -> vector<32x32xf32>
    %216 = vector.broadcast %197 : vector<1x32xf32> to vector<32x32xf32>
    %217 = arith.addf %215, %216 : vector<32x32xf32>
    %cst_123 = arith.constant 0.000000e+00 : f32
    %218 = vector.broadcast %cst_123 : f32 to vector<32x32xf32>
    %219 = arith.maximumf %217, %218 : vector<32x32xf32>
    %220 = arith.truncf %219 : vector<32x32xf32> to vector<32x32xbf16>
    %cst_124 = arith.constant dense<0.000000e+00> : vector<32x32xf32>
    %221 = tpu.matmul %220, %199, %cst_124 {dimension_numbers = #tpu.dot_dimension_numbers<[1], [0], [0], [1], [0, 0, 1, 1], [], []>} : vector<32x32xbf16>, vector<32x32xbf16>, vector<32x32xf32> -> vector<32x32xf32>
    %222 = vector.broadcast %201 : vector<1x32xf32> to vector<32x32xf32>
    %223 = arith.addf %221, %222 : vector<32x32xf32>
    %cst_125 = arith.constant 0.000000e+00 : f32
    %224 = vector.broadcast %cst_125 : f32 to vector<32x32xf32>
    %225 = arith.maximumf %223, %224 : vector<32x32xf32>
    %226 = arith.addf %192, %225 : vector<32x32xf32>
    %cst_126 = arith.constant dense<0.000000e+00> : vector<32xf32>
    %227 = vector.multi_reduction <add>, %226, %cst_126 [0] : vector<32x32xf32> to vector<32xf32>
    %228 = vector.shape_cast %227 : vector<32xf32> to vector<1x32xf32>
    %cst_127 = arith.constant 3.200000e+01 : f32
    %229 = vector.broadcast %cst_127 : f32 to vector<1x32xf32>
    %230 = arith.divf %228, %229 : vector<1x32xf32>
    %231 = vector.broadcast %230 : vector<1x32xf32> to vector<32x32xf32>
    %232 = arith.subf %226, %231 : vector<32x32xf32>
    %c0_128 = arith.constant 0 : index
    %c0_129 = arith.constant 0 : index
    %233 = vector.load %arg21[%c0_128, %c0_129] : memref<32x32xf32, #tpu.memory_space<vmem>>, vector<32x32xf32>
    tpu.vector_store %arg21[%c0_128, %c0_129], %232 {strides = array<i32>} : memref<32x32xf32, #tpu.memory_space<vmem>>, vector<32x32xf32>,
    return
  }
}

</mosaic_0001>

<bundles_post_ra>
// kernel: gin_shared_forward.1
= control target key start
LH: loop header
LB: loop body
LE: loop exit
PB: predicated region body
PF: predicated region fallthrough
CT: control target
= control target key end

     0   :  { %s2748_s0 = inlined_call_operand.vmem [shape: f32[2], index: 0, kind: input, shape index: {}]   ;;  %s2749_s1 = inlined_call_operand.vmem [shape: f32[2], index: 1, kind: input, shape index: {}]   ;;  %s2750_s2 = inlined_call_operand.vmem [shape: f32[16,4], index: 2, kind: input, shape index: {}]   ;;  %s2751_s3 = inlined_call_operand.vmem [shape: f32[16,3], index: 3, kind: input, shape index: {}]   ;;  %s2752_s4 = inlined_call_operand.vmem [shape: bf16[4,32], index: 4, kind: input, shape index: {}]   ;;  %s2753_s5 = inlined_call_operand.vmem [shape: bf16[3,32], index: 5, kind: input, shape index: {}]   ;;  %s2754_s6 = inlined_call_operand.vmem [shape: f32[1,32], index: 6, kind: input, shape index: {}]   ;;  %s2755_s7 = inlined_call_operand.vmem [shape: bf16[32,32], index: 7, kind: input, shape index: {}]   ;;  %s2756_s8 = inlined_call_operand.vmem [shape: f32[1,32], index: 8, kind: input, shape index: {}]   ;;  %s2757_s9 = inlined_call_operand.vmem [shape: bf16[16,16], index: 9, kind: input, shape index: {}]   ;;  %s2758_s10 = inlined_call_operand.vmem [shape: bf16[2,32,32], index: 10, kind: input, shape index: {}]   ;;  %s2759_s11 = inlined_call_operand.vmem [shape: f32[2,1,32], index: 11, kind: input, shape index: {}]   ;;  %s2760_s12 = inlined_call_operand.vmem [shape: bf16[2,32,32], index: 12, kind: input, shape index: {}]   ;;  %s2761_s13 = inlined_call_operand.vmem [shape: f32[2,1,32], index: 13, kind: input, shape index: {}]   ;;  %s2762_s14 = inlined_call_operand.vmem [shape: f32[3,16], index: 14, kind: input, shape index: {}]   ;;  %s2763_s15 = inlined_call_operand.vmem [shape: f32[32,3], index: 15, kind: input, shape index: {}]   ;;  %s2764_s16 = inlined_call_operand.vmem [shape: bf16[32,32], index: 16, kind: input, shape index: {}]   ;;  %s2765_s17 = inlined_call_operand.vmem [shape: bf16[2,32,32], index: 17, kind: input, shape index: {}]   ;;  %s2766_s18 = inlined_call_operand.vmem [shape: f32[2,1,32], index: 18, kind: input, shape index: {}]   ;;  %s2767_s19 = inlined_call_operand.vmem [shape: bf16[2,32,32], index: 19, kind: input, shape index: {}]   ;;  %s2768_s20 = inlined_call_operand.vmem [shape: f32[2,1,32], index: 20, kind: input, shape index: {}]   ;;  %s2769_s21 = inlined_call_operand.hbm [shape: f32[32,32], index: 21, kind: output, shape index: {}]  }
   0x1   :  { %2772 = sst [smem:[#allocation11_spill]] %s2748_s0 }
   0x2   :  { %2773 = sst [smem:[#allocation12_spill]] %s2749_s1 }
   0x3   :  { %2774 = sst [smem:[#allocation13_spill]] %s2750_s2 }
   0x4   :  { %2775 = sst [smem:[#allocation14_spill]] %s2751_s3 }
   0x5   :  { %2776 = sst [smem:[#allocation15_spill]] %s2752_s4 }
   0x6   :  { %2777 = sst [smem:[#allocation16_spill]] %s2753_s5 }
   0x7   :  { %26 = vsyncpa [#allocation4], 0 }
   0x8   :  { %27 = vsyncpa [#allocation6], 0 }
   0x9   :  { %28 = vsyncpa [#allocation3], 0  ;;  %s2778_s26 = sld [smem:[#allocation11_spill]]  ;;  %s2779_s29 = sld [smem:[#allocation12_spill]] }
   0xf   :  { %s35_s27 = sshll.u32 %s2778_s26, 4  ;;  %s45_s0 = sshll.u32 %s2779_s29, 4  ;;  %s36_s27 = int_to_ptr.vmem [resolvable:$true] %s35_s27  ;;  %s46_s0 = int_to_ptr.vmem [resolvable:$true] %s45_s0 }
  0x10   :  { %s2134_s4 = scalar_lea.vmem %s36_s27, 16  ;;  %p2139_p1 = scmp.lt.s32.totalorder %s36_s27, %s36_s27 }
  0x11   :  { %p2135_p0 = scmp.ne.s32.totalorder %s36_s27, %s2134_s4  ;;  %p2140_p2 = scmp.lt.s32.totalorder %s2134_s4, %s2134_s4 }
  0x13   :  { %p2141_p3 = por %p2140_p2, %p2139_p1 }
  0x15   :  { %p2142_p4 = pnand %p2141_p3, %p2135_p0 }
  0x17   :  { %2145 = shalt.err (!%p2142_p4)
}
  0x18   :  { %s2186_s30 = smov [#allocation2]   ;;  %s2146_s5 = scalar_lea.vmem %s46_s0, 16 }
  0x19   :  { %38 = dma.vmem_to_smem %s36_s27, 16, %s2186_s30, [#allocation4]  }
  0x1a   :  { %p2147_p5 = scmp.ne.s32.totalorder %s46_s0, %s2146_s5  ;;  %p2151_p6 = scmp.lt.s32.totalorder %s46_s0, %s46_s0 }
  0x1b   :  { %p2152_p7 = scmp.lt.s32.totalorder %s2146_s5, %s2146_s5 }
  0x1d   :  { %p2153_p8 = por %p2152_p7, %p2151_p6 }
  0x1f   :  { %p2154_p9 = pnand %p2153_p8, %p2147_p5 }
  0x21   :  { %2157 = shalt.err (!%p2154_p9)
}
  0x22   :  { %s2187_s22 = smov [#allocation5]  }
  0x23   :  { %48 = dma.vmem_to_smem %s46_s0, 16, %s2187_s22, [#allocation6]  }
  0x24   :  { %2180 = dma.done.wait [#allocation4], 16  }
  0x25   :  { %2181 = vsyncadd [#allocation4], 4294967280 }
  0x26   :  { %2182 = dma.done.wait [#allocation6], 16  }
  0x27   :  { %2183 = vsyncadd [#allocation6], 4294967280 }
  0x28   :  { %93 = sfence }
  0x29   :  { %s2780_s24 = sld [smem:[#allocation15_spill]]  ;;  %vm114_vm0 = vcmask 1041408   ;;  %vm113_vm1 = vcmask 1040384   ;;  %v2188_v1 = vmov 0.0   ;;  %s2781_s26 = sld [smem:[#allocation16_spill]]  ;;  %vm2189_vm2 = vmmov 0  }
  0x2a   :  { %1961 = vmatprep.subr.bf16.mxu1 %v2188_v1  ;;  %1955 = vmatprep.subr.bf16.mxu0 %v2188_v1  ;;  %s2782_s28 = sld [smem:[#allocation13_spill]]  ;;  %v2190_v6 = vmov 65535   ;;  %vm161_vm3 = vcmask 31744   ;;  %s2783_s5 = sld [smem:[#allocation14_spill]]  ;;  %vm109_vm4 = vcmask 23552   ;;  %v2097_v14 = vld [vmem:[%s2755_s7] sm:$0xff]  }
  0x2b   :  { %1963 = vmatprep.mubr.msk.bf16.mxu1 %vm2189_vm2, %v2188_v1  ;;  %v115_v7 = vsel %vm113_vm1, 4294967295, %v2190_v6  ;;  %1957 = vmatprep.mubr.msk.bf16.mxu0 %vm2189_vm2, %v2188_v1  ;;  %v2098_v15 = vld [vmem:[%s2755_s7 + $0x8] sm:$0xff]   ;;  %v1816_v20 = vld [vmem:[%s2754_s6] ss:$0 sm:$0xff]  ;;  %vm238_vm5 = vcmask 261120   ;;  %vm302_vm6 = vcmask 130048  }
  0x2c   :  { %v116_v11 = vsel %vm114_vm0, %v115_v7, 0  ;;  %v1817_v32 = vld [vmem:[%s2756_s8] ss:$0 sm:$0xff]  ;;  %v2101_v42 = vld [vmem:[%s2758_s10 + $0x8] sm:$0xff]   ;;  %s285_s4 = sld [smem:[#allocation2]]  ;;  %vm775_vm7 = vcmask 1042432  }
  0x2d   :  { %v2369_v40 = vld [vmem:[%s2757_s9] sm:$0xff]   ;;  %vm751_vm8 = vcmask 124928   ;;  %s1874_s25 = sld [smem:[#allocation5 + $0x1]] }
  0x2e   :  { %v2100_v41 = vld [vmem:[%s2758_s10] sm:$0xff]  }
  0x2f   :  { %v99_v0 = vld [vmem:[%s2780_s24] sm:$0x3] }
  0x30   :  { %v166_v2 = vsel %vm114_vm0, %v99_v0, 0  ;;  %v100_v3 = vld [vmem:[%s2781_s26] sm:$0x3]  ;;  %v96_v5 = vld [vmem:[%s2782_s28 + $0x8] sm:$0xff] }
  0x31   :  { %v95_v4 = vld [vmem:[%s2782_s28] sm:$0xff]  ;;  %1962 = vmatpush3.bf16.msra.mxu1 %v166_v2  ;;  %v98_v10 = vld [vmem:[%s2783_s5 + $0x8] sm:$0xff]  ;;  %v118_v12 = vand.u32 %v116_v11, %v100_v3 }
  0x32   :  { %v107_v8 = vpack.c.bf16 %v96_v5, %v95_v4  ;;  %v97_v9 = vld [vmem:[%s2783_s5] sm:$0xff]  ;;  %1975 = vmatprep.subr.bf16.mxu1 %v2188_v1  ;;  %s360_s30 = sadd.f32 1.0, %s285_s4  ;;  %v2103_v3 = vld [vmem:[%s2760_s12 + $0x8] sm:$0xff]  }
  0x33   :  { %v108_v13 = vpack.c.bf16 %v98_v10, %v97_v9  ;;  %1956 = vmatpush3.bf16.msra.mxu0 %v118_v12  ;;  %v2102_v2 = vld [vmem:[%s2760_s12] sm:$0xff]  }
  0x34   :  { %1964 = vmatmul.mubr.msk.bf16.vlgmr.msra.gmra.mrb[0].mxu1 %vm161_vm3, %v107_v8  ;;  %1967 = vmatprep.subr.bf16.mxu0 %v2188_v1  ;;  %v361_v56 = vstv %s360_s30  ;;  %v1823_v4 = vld [vmem:[%s2759_s11] ss:$0 sm:$0xff] }
  0x35   :  { %1977 = vmatprep.mubr.msk.bf16.mxu1 %vm2189_vm2, %v2188_v1 }
  0x36   :  { %1958 = vmatmul.mubr.msk.bf16.vlgmr.msra.gmra.mrb[0].mxu0 %vm109_vm4, %v108_v13 }
  0x37   :  { %1971 = vmatprep.mubr.msk.bf16.mxu0 %vm2189_vm2, %v2188_v1  ;;  %1968 = vmatpush3.bf16.msra.mxu0 %v2097_v14  ;;  %v1827_v14 = vld [vmem:[%s2761_s13] ss:$0 sm:$0xff] }
  0x38   :  { %1969 = vmatprep.subr.bf16.mxu0 %v2188_v1 }
  0x3b   :  { %1970 = vmatpush3.bf16.msra.mxu0 %v2098_v15 }
  0x3c   :  { %1981 = vmatprep.subr.bf16.mxu0 %v2188_v1 }
 0x107   :  { %v202_v16 = vpop.f32.mrb[0].mxu1 }
 0x108   :  { %v1965_v17 = vpop.f32.mrb[1].mxu1 }
 0x109   :  { %v205_v18 = vpop.f32.mrb[2].mxu1  ;;  %v154_v21 = vpop.f32.mrb[0].mxu0 }
 0x10a   :  { %v1966_v19 = vpop.f32.mrb[3].mxu1  ;;  %v203_v22 = vadd.f32 %v202_v16, %v154_v21  ;;  %v1959_v23 = vpop.f32.mrb[1].mxu0 }
 0x10b   :  { %v157_v24 = vpop.f32.mrb[2].mxu0 }
 0x10c   :  { %v215_v25 = vadd.f32 %v1816_v20, %v203_v22  ;;  %v206_v26 = vadd.f32 %v205_v18, %v157_v24  ;;  %v1960_v27 = vpop.f32.mrb[3].mxu0 }
 0x10e   :  { %v216_v28 = vadd.f32 %v1816_v20, %v206_v26  ;;  %v217_v29 = vmax.f32 %v215_v25, 0.0 }
 0x110   :  { %v218_v30 = vmax.f32 %v216_v28, 0.0 }
 0x112   :  { %v219_v31 = vpack.c.bf16 %v218_v30, %v217_v29 }
 0x114   :  { %1972 = vmatmul.mubr.msk.bf16.vlgmr.msra.gmra.mrb[4].mxu0 %vm238_vm5, %v219_v31 }
 0x115   :  { %1985 = vmatprep.mubr.msk.bf16.mxu0 %vm2189_vm2, %v2188_v1  ;;  %1982 = vmatpush3.bf16.msra.mxu0 %v2100_v41  ;;  %v729_v41 = vld [vmem:[%s2762_s14] sm:$0x7]  ;;  %s1831_s14 = sld [smem:[#allocation2 + $0x1]] }
 0x116   :  { %1983 = vmatprep.subr.bf16.mxu0 %v2188_v1 }
 0x119   :  { %1984 = vmatpush3.bf16.msra.mxu0 %v2101_v42  ;;  %v731_v42 = vld [vmem:[%s2763_s15 + $0x8] sm:$0xff] }
 0x11a   :  { %1997 = vmatprep.subr.bf16.mxu0 %v2188_v1 }
 0x1e7   :  { %v276_v33 = vpop.f32.mrb[4].mxu0 }
 0x1e8   :  { %v1973_v34 = vpop.f32.mrb[5].mxu0  ;;  %v2360_v36 = vadd.f32 %v1817_v32, %v276_v33 }
 0x1e9   :  { %v279_v35 = vpop.f32.mrb[6].mxu0 }
 0x1ea   :  { %v2362_v37 = vadd.f32 %v1817_v32, %v279_v35  ;;  %v1974_v38 = vpop.f32.mrb[7].mxu0  ;;  %v362_v58 = vmul.f32 %v361_v56, %v2360_v36 }
 0x1ec   :  { %v296_v39 = vpack.c.bf16 %v2362_v37, %v2360_v36  ;;  %v363_v59 = vmul.f32 %v361_v56, %v2362_v37 }
 0x1ee   :  { %1976 = vmatpush3.bf16.msra.mxu1 %v296_v39  ;;  %v2105_v39 = vld [vmem:[%s2758_s10 + $0x18] sm:$0xff]  }
 0x1ef   :  { %1989 = vmatprep.subr.bf16.mxu1 %v2188_v1 }
 0x1f1   :  { %1978 = vmatmul.mubr.msk.bf16.vlgmr.msra.gmra.mrb[4].mxu1 %vm302_vm6, %v2369_v40 }
 0x1f2   :  { %1993 = vmatprep.mubr.msk.bf16.mxu1 %vm2189_vm2, %v2188_v1  ;;  %1990 = vmatpush3.bf16.msra.mxu1 %v2102_v2 }
 0x1f3   :  { %1991 = vmatprep.subr.bf16.mxu1 %v2188_v1 }
 0x1f6   :  { %1992 = vmatpush3.bf16.msra.mxu1 %v2103_v3 }
 0x1f7   :  { %2003 = vmatprep.subr.bf16.mxu1 %v2188_v1 }
 0x2c4   :  { %v340_v43 = vpop.f32.mrb[4].mxu1 }
 0x2c5   :  { %v1979_v44 = vpop.f32.mrb[5].mxu1  ;;  %v347_v46 = vsel %vm238_vm5, %v340_v43, 0.0 }
 0x2c6   :  { %v343_v45 = vpop.f32.mrb[6].mxu1  ;;  %v733_v44 = vld [vmem:[%s2763_s15 + $0x18] sm:$0xff] }
 0x2c7   :  { %v348_v47 = vsel %vm238_vm5, %v343_v45, 0.0  ;;  %v1980_v48 = vpop.f32.mrb[7].mxu1 }
 0x2c8   :  { %v349_v49 = vadd.f32 %v348_v47, %v347_v46  ;;  %v735_v47 = vmul.f32 %v731_v42, %v731_v42  ;;  %v737_v48 = vmul.f32 %v733_v44, %v733_v44 }
 0x2ca   :  { %v350_v50 = vrot.slane %v349_v49, 4 }
 0x2cc   :  { %v351_v51 = vadd.f32 %v350_v50, %v349_v49 }
 0x2ce   :  { %v352_v52 = vrot.slane %v351_v51, 2 }
 0x2d0   :  { %v353_v53 = vadd.f32 %v352_v52, %v351_v51  ;;  %v741_v51 = vsel %vm109_vm4, %v735_v47, 0.0  ;;  %v747_v52 = vsel %vm109_vm4, %v737_v48, 0.0 }
 0x2d2   :  { %v354_v54 = vrot.slane %v353_v53, 1 }
 0x2d4   :  { %v355_v55 = vadd.f32 %v354_v54, %v353_v53 }
 0x2d6   :  { %v357_v57 = vmul.f32 0.0625, %v355_v55 }
 0x2d8   :  { %v358_v60 = vsub.f32 %v340_v43, %v357_v57  ;;  %v359_v61 = vsub.f32 %v343_v45, %v357_v57  ;;  %v732_v43 = vld [vmem:[%s2763_s15 + $0x10] sm:$0xff] }
 0x2d9   :  { %v736_v46 = vmul.f32 %v732_v43, %v732_v43 }
 0x2da   :  { %v364_v62 = vadd.f32 %v362_v58, %v358_v60  ;;  %v365_v63 = vadd.f32 %v363_v59, %v359_v61 }
 0x2db   :  { %v744_v50 = vsel %vm109_vm4, %v736_v46, 0.0 }
 0x2dc   :  { %v366_v0 = vpack.c.bf16 %v365_v63, %v364_v62  ;;  %745 = vadd.xlane.f32.xlu1 %v744_v50 }
 0x2de   :  { %1986 = vmatmul.mubr.msk.bf16.vlgmr.msra.gmra.mrb[8].mxu0 %vm238_vm5, %v366_v0 }
 0x2df   :  { %1999 = vmatprep.mubr.msk.bf16.mxu0 %vm2189_vm2, %v2188_v1 }
 0x2e0   :  { %748 = vadd.xlane.f32.xlu1 %v747_v52 }
 0x3b1   :  { %v422_v5 = vpop.f32.mrb[8].mxu0 }
 0x3b2   :  { %v423_v6 = vadd.f32 %v1823_v4, %v422_v5  ;;  %v1987_v7 = vpop.f32.mrb[9].mxu0 }
 0x3b3   :  { %v425_v8 = vpop.f32.mrb[10].mxu0 }
 0x3b4   :  { %v426_v9 = vadd.f32 %v1823_v4, %v425_v8  ;;  %v1988_v10 = vpop.f32.mrb[11].mxu0  ;;  %v429_v11 = vmax.f32 %v423_v6, 0.0 }
 0x3b6   :  { %v430_v12 = vmax.f32 %v426_v9, 0.0 }
 0x3b8   :  { %v431_v13 = vpack.c.bf16 %v430_v12, %v429_v11  ;;  %v2106_v12 = vld [vmem:[%s2760_s12 + $0x10] sm:$0xff]  }
 0x3ba   :  { %1994 = vmatmul.mubr.msk.bf16.vlgmr.msra.gmra.mrb[8].mxu1 %vm238_vm5, %v431_v13  ;;  %v2107_v13 = vld [vmem:[%s2760_s12 + $0x18] sm:$0xff]  }
 0x3bb   :  { %2007 = vmatprep.mubr.msk.bf16.mxu1 %vm2189_vm2, %v2188_v1 }
 0x48d   :  { %v487_v15 = vpop.f32.mrb[8].mxu1 }
 0x48e   :  { %v488_v16 = vadd.f32 %v1827_v14, %v487_v15  ;;  %v1995_v17 = vpop.f32.mrb[9].mxu1 }
 0x48f   :  { %v490_v18 = vpop.f32.mrb[10].mxu1 }
 0x490   :  { %v494_v19 = vmax.f32 %v488_v16, 0.0  ;;  %v491_v20 = vadd.f32 %v1827_v14, %v490_v18  ;;  %v1996_v21 = vpop.f32.mrb[11].mxu1  ;;  %v750_v14 = vmul.f32 %v729_v41, %v729_v41 }
 0x492   :  { %v496_v22 = vadd.f32 %v494_v19, %v2360_v36  ;;  %v495_v23 = vmax.f32 %v491_v20, 0.0  ;;  %v752_v15 = vsel %vm751_vm8, %v750_v14, 0.0  ;;  %v1843_v20 = vld [vmem:[%s2759_s11 + $0x1] ss:$0 sm:$0xff] }
 0x493   :  { %v753_v16 = vrot.slane %v752_v15, 4 }
 0x494   :  { %v497_v24 = vadd.f32 %v495_v23, %v2362_v37  ;;  %v498_v25 = vsel %vm238_vm5, %v496_v22, 0.0  ;;  %v2104_v37 = vld [vmem:[%s2758_s10 + $0x10] sm:$0xff]  }
 0x495   :  { %2004 = vmatpush3.bf16.msra.mxu1 %v2104_v37  ;;  %v754_v17 = vadd.f32 %v753_v16, %v752_v15 }
 0x496   :  { %v499_v26 = vsel %vm238_vm5, %v497_v24, 0.0  ;;  %2005 = vmatprep.subr.bf16.mxu1 %v2188_v1 }
 0x497   :  { %v500_v27 = vadd.f32 %v499_v26, %v498_v25  ;;  %v755_v18 = vrot.slane %v754_v17, 2  ;;  %v746_v26 = vpop.xlane.xlu1 %745 }
 0x499   :  { %v501_v28 = vrot.slane %v500_v27, 4  ;;  %2006 = vmatpush3.bf16.msra.mxu1 %v2105_v39  ;;  %v756_v19 = vadd.f32 %v755_v18, %v754_v17 }
 0x49a   :  { %2019 = vmatprep.subr.msk.mxu1 %vm775_vm7, %v729_v41 }
 0x49b   :  { %v502_v29 = vadd.f32 %v501_v28, %v500_v27  ;;  %v749_v37 = vpop.xlane.xlu1 %748 }
 0x49d   :  { %v503_v30 = vrot.slane %v502_v29, 2 }
 0x49f   :  { %v504_v31 = vadd.f32 %v503_v30, %v502_v29 }
 0x4a1   :  { %v505_v32 = vrot.slane %v504_v31, 1 }
 0x4a3   :  { %v506_v33 = vadd.f32 %v505_v32, %v504_v31 }
 0x4a5   :  { %v507_v34 = vmul.f32 0.0625, %v506_v33 }
 0x4a7   :  { %v2412_v35 = vsub.f32 %v496_v22, %v507_v34  ;;  %v2414_v38 = vsub.f32 %v497_v24, %v507_v34  ;;  %v757_v24 = vrot.slane %v756_v19, 1 }
 0x4a9   :  { %v525_v36 = vpack.c.bf16 %v2414_v38, %v2412_v35  ;;  %v758_v32 = vadd.f32 %v757_v24, %v756_v19 }
 0x4ab   :  { %1998 = vmatpush3.bf16.msra.mxu0 %v525_v36  ;;  %v761_v52 = vadd.f32 %v758_v32, %v746_v26 }
 0x4ac   :  { %2011 = vmatprep.subr.bf16.mxu0 %v2188_v1 }
 0x4ae   :  { %2000 = vmatmul.mubr.msk.bf16.vlgmr.msra.gmra.mrb[12].mxu0 %vm302_vm6, %v2369_v40  ;;  %v730_v40 = vld [vmem:[%s2763_s15] sm:$0xff]  ;;  %s579_s15 = sadd.f32 1.0, %s1831_s14 }
 0x4af   :  { %2015 = vmatprep.mubr.msk.bf16.mxu0 %vm2189_vm2, %v2188_v1  ;;  %v734_v45 = vmul.f32 %v730_v40, %v730_v40  ;;  %2012 = vmatpush3.bf16.msra.mxu0 %v2106_v12 }
 0x4b0   :  { %v580_v3 = vstv %s579_s15  ;;  %2013 = vmatprep.subr.bf16.mxu0 %v2188_v1 }
 0x4b1   :  { %v738_v49 = vsel %vm109_vm4, %v734_v45, 0.0  ;;  %v581_v7 = vmul.f32 %v580_v3, %v2412_v35  ;;  %v582_v8 = vmul.f32 %v580_v3, %v2414_v38  ;;  %v762_v45 = vadd.f32 %v758_v32, %v749_v37 }
 0x4b2   :  { %739 = vadd.xlane.f32.xlu0 %v738_v49 }
 0x4b3   :  { %2014 = vmatpush3.bf16.msra.mxu0 %v2107_v13 }
 0x4b6   :  { %742 = vadd.xlane.f32.xlu0 %v741_v51 }
 0x53f   :  { %v740_v21 = vpop.xlane.xlu0 %739 }
 0x543   :  { %v743_v29 = vpop.xlane.xlu0 %742 }
 0x544   :  { %v760_v34 = vadd.f32 %v758_v32, %v743_v29 }
 0x581   :  { %v560_v53 = vpop.f32.mrb[12].mxu0 }
 0x582   :  { %v2001_v54 = vpop.f32.mrb[13].mxu0  ;;  %v567_v56 = vsel %vm238_vm5, %v560_v53, 0.0 }
 0x583   :  { %v563_v55 = vpop.f32.mrb[14].mxu0 }
 0x584   :  { %v568_v57 = vsel %vm238_vm5, %v563_v55, 0.0  ;;  %v2002_v58 = vpop.f32.mrb[15].mxu0 }
 0x585   :  { %v569_v59 = vadd.f32 %v568_v57, %v567_v56 }
 0x587   :  { %v570_v60 = vrot.slane %v569_v59, 4 }
 0x589   :  { %v571_v61 = vadd.f32 %v570_v60, %v569_v59 }
 0x58b   :  { %v572_v62 = vrot.slane %v571_v61, 2 }
 0x58d   :  { %v573_v63 = vadd.f32 %v572_v62, %v571_v61 }
 0x58f   :  { %v574_v0 = vrot.slane %v573_v63, 1 }
 0x591   :  { %v575_v2 = vadd.f32 %v574_v0, %v573_v63 }
 0x593   :  { %v576_v4 = vmul.f32 0.0625, %v575_v2 }
 0x595   :  { %v577_v5 = vsub.f32 %v560_v53, %v576_v4  ;;  %v578_v6 = vsub.f32 %v563_v55, %v576_v4 }
 0x597   :  { %v583_v9 = vadd.f32 %v581_v7, %v577_v5  ;;  %v584_v10 = vadd.f32 %v582_v8, %v578_v6 }
 0x599   :  { %v585_v11 = vpack.c.bf16 %v584_v10, %v583_v9 }
 0x59b   :  { %2008 = vmatmul.mubr.msk.bf16.vlgmr.msra.gmra.mrb[12].mxu1 %vm238_vm5, %v585_v11 }
 0x59c   :  { %2020 = vmatpush3.msk.msra.mxu1 %vm775_vm7, %v729_v41  ;;  %2021 = vmatprep.mubr.msk.f32.mxu1 %vm109_vm4, %v730_v40  ;;  %v884_v41 = vlaneseq }
 0x59e   :  { %v885_v49 = vand.u32 127, %v884_v41 }
 0x5a3   :  { %2022 = vmatmul.mubr.msk.f32.vlgmr.msra.gmra.mrb[16].mxu1 %vm109_vm4, %v731_v42  ;;  %v759_v42 = vadd.f32 %v758_v32, %v740_v21 }
 0x5a4   :  { %2024 = vmatprep.mubr.msk.f32.mxu1 %vm109_vm4, %v732_v43 }
 0x5a7   :  { %2025 = vmatmul.mubr.msk.f32.gmra.mrb[18].mxu1 %vm109_vm4, %v733_v44 }
 0x66e   :  { %v641_v22 = vpop.f32.mrb[12].mxu1 }
 0x66f   :  { %v642_v23 = vadd.f32 %v1843_v20, %v641_v22  ;;  %v2009_v1 = vpop.f32.mrb[13].mxu1 }
 0x670   :  { %v644_v25 = vpop.f32.mrb[14].mxu1 }
 0x671   :  { %v645_v27 = vadd.f32 %v1843_v20, %v644_v25  ;;  %v2010_v28 = vpop.f32.mrb[15].mxu1  ;;  %v648_v30 = vmax.f32 %v642_v23, 0.0 }
 0x673   :  { %v649_v31 = vmax.f32 %v645_v27, 0.0 }
 0x675   :  { %v650_v33 = vpack.c.bf16 %v649_v31, %v648_v30  ;;  %v1847_v31 = vld [vmem:[%s2761_s13 + $0x1] ss:$0 sm:$0xff] }
 0x676   :  { %v2023_v36 = vpop.f32.mrb[16].mxu1 }
 0x677   :  { %v865_v39 = vmul.f32 2.0, %v2023_v36  ;;  %2016 = vmatmul.mubr.msk.bf16.vlgmr.msra.gmra.mrb[16].mxu0 %vm238_vm5, %v650_v33  ;;  %v845_v40 = vpop.f32.mrb[17].mxu1 }
 0x678   :  { %v864_v43 = vmul.f32 2.0, %v845_v40 }
 0x679   :  { %v869_v44 = vsub.f32 %v760_v34, %v865_v39 }
 0x67a   :  { %v868_v46 = vsub.f32 %v759_v42, %v864_v43  ;;  %v2026_v47 = vpop.f32.mrb[18].mxu1 }
 0x67b   :  { %v2471_v48 = vmax.f32 %v869_v44, 0.0  ;;  %v867_v50 = vmul.f32 2.0, %v2026_v47  ;;  %v855_v51 = vpop.f32.mrb[19].mxu1 }
 0x67c   :  { %v2473_v53 = vmax.f32 %v868_v46, 0.0  ;;  %v866_v54 = vmul.f32 2.0, %v855_v51 }
 0x67d   :  { %v891_v55 = vand.u32 4294967280, %v2471_v48  ;;  %v871_v56 = vsub.f32 %v762_v45, %v867_v50 }
 0x67e   :  { %v890_v57 = vand.u32 4294967280, %v2473_v53  ;;  %v870_v58 = vsub.f32 %v761_v52, %v866_v54 }
 0x67f   :  { %v2477_v59 = vor.u32 %v891_v55, %v885_v49  ;;  %v2479_v60 = vmax.f32 %v871_v56, 0.0 }
 0x680   :  { %v2481_v61 = vor.u32 %v890_v57, %v885_v49  ;;  %v2483_v62 = vmax.f32 %v870_v58, 0.0 }
 0x681   :  { %v893_v63 = vand.u32 4294967280, %v2479_v60  ;;  %v913_v0 = vsel %vm302_vm6, %v2477_v59, 2147483647 }
 0x682   :  { %v892_v2 = vand.u32 4294967280, %v2483_v62  ;;  %v915_v3 = vshra.s32 %v913_v0, 16  ;;  %v898_v4 = vsel %vm302_vm6, %v2481_v61, 2147483647  ;;  %v914_v16 = vand.u32 65535, %v913_v0 }
 0x683   :  { %v2491_v5 = vor.u32 %v893_v63, %v885_v49  ;;  %v900_v6 = vshra.s32 %v898_v4, 16  ;;  %v899_v17 = vand.u32 65535, %v898_v4  ;;  %v879_v63 = vmax.f32 %v2479_v60, 1e-16 }
 0x684   :  { %v2493_v7 = vor.u32 %v892_v2, %v885_v49  ;;  %v917_v8 = vcvt.s32.f32 %v915_v3  ;;  %v916_v19 = vcvt.s32.f32 %v914_v16  ;;  %v878_v0 = vmax.f32 %v2483_v62, 1e-16 }
 0x685   :  { %v902_v9 = vcvt.s32.f32 %v900_v6  ;;  %v943_v10 = vsel %vm302_vm6, %v2491_v5, 2147483647  ;;  %v901_v22 = vcvt.s32.f32 %v899_v17 }
 0x686   :  { %918 = vmin.xlane.f32.xlu1 %v917_v8  ;;  %v945_v11 = vshra.s32 %v943_v10, 16  ;;  %v928_v12 = vsel %vm302_vm6, %v2493_v7, 2147483647  ;;  %v944_v20 = vand.u32 65535, %v943_v10 }
 0x687   :  { %903 = vmin.xlane.f32.xlu0 %v902_v9  ;;  %v930_v13 = vshra.s32 %v928_v12, 16  ;;  %v929_v23 = vand.u32 65535, %v928_v12 }
 0x688   :  { %v947_v14 = vcvt.s32.f32 %v945_v11  ;;  %v946_v26 = vcvt.s32.f32 %v944_v20 }
 0x689   :  { %v932_v15 = vcvt.s32.f32 %v930_v13  ;;  %v931_v28 = vcvt.s32.f32 %v929_v23 }
 0x68a   :  { %948 = vmin.xlane.f32.xlu1 %v947_v14 }
 0x68b   :  { %933 = vmin.xlane.f32.xlu0 %v932_v15 }
 0x713   :  { %v919_v18 = vpop.xlane.xlu1 %918 }
 0x714   :  { %v904_v21 = vpop.xlane.xlu0 %903  ;;  %vm920_vm9 = vcmp.eq.f32.partialorder %v917_v8, %v919_v18  ;;  %v925_v2 = vcvt.f32.s32 %v919_v18 }
 0x715   :  { %v921_v1 = vsel %vm920_vm9, %v916_v19, inf  ;;  %vm905_vm10 = vcmp.eq.f32.partialorder %v902_v9, %v904_v21  ;;  %v910_v3 = vcvt.f32.s32 %v904_v21 }
 0x716   :  { %922 = vmin.xlane.f32.xlu1 %v921_v1  ;;  %v906_v24 = vsel %vm905_vm10, %v901_v22, inf  ;;  %v926_v6 = vshll.u32 %v925_v2, 16 }
 0x717   :  { %v949_v25 = vpop.xlane.xlu1 %948  ;;  %907 = vmin.xlane.f32.xlu0 %v906_v24  ;;  %v911_v12 = vshll.u32 %v910_v3, 16 }
 0x718   :  { %v934_v27 = vpop.xlane.xlu0 %933  ;;  %vm950_vm11 = vcmp.eq.f32.partialorder %v947_v14, %v949_v25  ;;  %v955_v8 = vcvt.f32.s32 %v949_v25 }
 0x719   :  { %v951_v29 = vsel %vm950_vm11, %v946_v26, inf  ;;  %vm935_vm12 = vcmp.eq.f32.partialorder %v932_v15, %v934_v27  ;;  %v940_v9 = vcvt.f32.s32 %v934_v27 }
 0x71a   :  { %952 = vmin.xlane.f32.xlu1 %v951_v29  ;;  %v936_v30 = vsel %vm935_vm12, %v931_v28, inf  ;;  %v956_v60 = vshll.u32 %v955_v8, 16 }
 0x71b   :  { %937 = vmin.xlane.f32.xlu0 %v936_v30  ;;  %v941_v16 = vshll.u32 %v940_v9, 16 }
 0x74a   :  { %v706_v32 = vpop.f32.mrb[16].mxu0 }
 0x74b   :  { %v707_v33 = vadd.f32 %v1847_v31, %v706_v32  ;;  %v2017_v34 = vpop.f32.mrb[17].mxu0 }
 0x74c   :  { %v709_v36 = vpop.f32.mrb[18].mxu0 }
 0x74d   :  { %v713_v37 = vmax.f32 %v707_v33, 0.0  ;;  %v710_v39 = vadd.f32 %v1847_v31, %v709_v36  ;;  %v2018_v41 = vpop.f32.mrb[19].mxu0 }
 0x74f   :  { %v715_v40 = vadd.f32 %v713_v37, %v2412_v35  ;;  %v714_v42 = vmax.f32 %v710_v39, 0.0  ;;  %v877_v35 = vmax.f32 %v2471_v48, 1e-16 }
 0x751   :  { %v716_v43 = vadd.f32 %v714_v42, %v2414_v38  ;;  %v717_v44 = vsel %vm238_vm5, %v715_v40, 0.0  ;;  %v876_v38 = vmax.f32 %v2473_v53, 1e-16  ;;  %2118 = vrcp.f32 %v877_v35 }
 0x753   :  { %v718_v45 = vsel %vm238_vm5, %v716_v43, 0.0  ;;  %2120 = vrcp.f32 %v876_v38 }
 0x754   :  { %v719_v46 = vadd.f32 %v718_v45, %v717_v44  ;;  %2122 = vrcp.f32 %v879_v63 }
 0x755   :  { %2124 = vrcp.f32 %v878_v0 }
 0x756   :  { %v720_v47 = vrot.slane %v719_v46, 4 }
 0x758   :  { %v721_v49 = vadd.f32 %v720_v47, %v719_v46 }
 0x75a   :  { %v722_v50 = vrot.slane %v721_v49, 2 }
 0x75b   :  { %v2510_v15 = vpop.eup %2118 }
 0x75c   :  { %v723_v51 = vadd.f32 %v722_v50, %v721_v49 }
 0x75d   :  { %v2513_v18 = vpop.eup %2120 }
 0x75e   :  { %v724_v52 = vrot.slane %v723_v51, 1  ;;  %v2532_v28 = vpop.eup %2122 }
 0x75f   :  { %v2535_v29 = vpop.eup %2124 }
 0x760   :  { %v725_v54 = vadd.f32 %v724_v52, %v723_v51 }
 0x762   :  { %v726_v55 = vmul.f32 0.0625, %v725_v54 }
 0x764   :  { %v728_v56 = vsub.f32 %v716_v43, %v726_v55  ;;  %v727_v57 = vsub.f32 %v715_v40, %v726_v55 }
 0x766   :  { %v2085_v58 = vpack.c.bf16 %v728_v56, %v727_v57 }
 0x768   :  { %2086 = vmatprep.subr.bf16.mxu0 %v2085_v58 }
 0x769   :  { %2088 = vmatpush3.bf16.msra.mxu0 %v2085_v58 }
 0x7a3   :  { %v923_v4 = vpop.xlane.xlu1 %922 }
 0x7a4   :  { %v924_v10 = vcvt.f32.s32 %v923_v4  ;;  %v908_v11 = vpop.xlane.xlu0 %907 }
 0x7a5   :  { %v909_v48 = vcvt.f32.s32 %v908_v11 }
 0x7a6   :  { %v927_v13 = vadd.s32 %v926_v6, %v924_v10 }
 0x7a7   :  { %v912_v53 = vadd.s32 %v911_v12, %v909_v48  ;;  %v953_v14 = vpop.xlane.xlu1 %952 }
 0x7a8   :  { %vm959_vm13 = vcmp.eq.s32.totalorder %v2477_v59, %v927_v13  ;;  %v954_v62 = vcvt.f32.s32 %v953_v14  ;;  %v938_v17 = vpop.xlane.xlu0 %937 }
 0x7a9   :  { %v2516_v19 = vsel %vm959_vm13, %v2510_v15, 0.0  ;;  %vm958_vm14 = vcmp.eq.s32.totalorder %v2481_v61, %v912_v53  ;;  %v939_v20 = vcvt.f32.s32 %v938_v17  ;;  %v2520_v21 = vsel %vm959_vm13, 2147483647, %v2477_v59 }
 0x7aa   :  { %v2523_v22 = vsel %vm958_vm14, %v2513_v18, 0.0  ;;  %v957_v23 = vadd.s32 %v956_v60, %v954_v62  ;;  %v985_v1 = vsel %vm302_vm6, %v2520_v21, 2147483647  ;;  %v2528_v24 = vsel %vm958_vm14, 2147483647, %v2481_v61 }
 0x7ab   :  { %v942_v25 = vadd.s32 %v941_v16, %v939_v20  ;;  %v987_v26 = vshra.s32 %v985_v1, 16  ;;  %v970_v27 = vsel %vm302_vm6, %v2528_v24, 2147483647  ;;  %v986_v42 = vand.u32 65535, %v985_v1 }
 0x7ac   :  { %vm961_vm15 = vcmp.eq.s32.totalorder %v2491_v5, %v957_v23  ;;  %v972_v59 = vshra.s32 %v970_v27, 16  ;;  %v971_v43 = vand.u32 65535, %v970_v27 }
 0x7ad   :  { %v2538_v30 = vsel %vm961_vm15, %v2532_v28, 0.0  ;;  %vm960_vm0 = vcmp.eq.s32.totalorder %v2493_v7, %v942_v25  ;;  %v989_v31 = vcvt.s32.f32 %v987_v26  ;;  %v2542_v61 = vsel %vm961_vm15, 2147483647, %v2491_v5 }
 0x7ae   :  { %v2545_v32 = vsel %vm960_vm0, %v2535_v29, 0.0  ;;  %v974_v33 = vcvt.s32.f32 %v972_v59  ;;  %v1015_v34 = vsel %vm302_vm6, %v2542_v61, 2147483647  ;;  %v2550_v36 = vsel %vm960_vm0, 2147483647, %v2493_v7 }
 0x7af   :  { %990 = vmin.xlane.f32.xlu1 %v989_v31  ;;  %v1017_v37 = vshra.s32 %v1015_v34, 16  ;;  %v1000_v39 = vsel %vm302_vm6, %v2550_v36, 2147483647  ;;  %v988_v45 = vcvt.s32.f32 %v986_v42  ;;  %v1016_v46 = vand.u32 65535, %v1015_v34 }
 0x7b0   :  { %975 = vmin.xlane.f32.xlu0 %v974_v33  ;;  %v1002_v41 = vshra.s32 %v1000_v39, 16  ;;  %v973_v7 = vcvt.s32.f32 %v971_v43  ;;  %v1001_v49 = vand.u32 65535, %v1000_v39 }
 0x7b1   :  { %v1019_v40 = vcvt.s32.f32 %v1017_v37  ;;  %v1018_v54 = vcvt.s32.f32 %v1016_v46 }
 0x7b2   :  { %v1004_v5 = vcvt.s32.f32 %v1002_v41  ;;  %v1003_v56 = vcvt.s32.f32 %v1001_v49 }
 0x7b3   :  { %1020 = vmin.xlane.f32.xlu1 %v1019_v40 }
 0x7b4   :  { %1005 = vmin.xlane.f32.xlu0 %v1004_v5 }
 0x83c   :  { %v991_v44 = vpop.xlane.xlu1 %990 }
 0x83d   :  { %v976_v47 = vpop.xlane.xlu0 %975  ;;  %vm992_vm1 = vcmp.eq.f32.partialorder %v989_v31, %v991_v44  ;;  %v997_v35 = vcvt.f32.s32 %v991_v44 }
 0x83e   :  { %v993_v50 = vsel %vm992_vm1, %v988_v45, inf  ;;  %vm977_vm2 = vcmp.eq.f32.partialorder %v974_v33, %v976_v47  ;;  %v982_v38 = vcvt.f32.s32 %v976_v47 }
 0x83f   :  { %994 = vmin.xlane.f32.xlu1 %v993_v50  ;;  %v978_v51 = vsel %vm977_vm2, %v973_v7, inf  ;;  %v998_v0 = vshll.u32 %v997_v35, 16 }
 0x840   :  { %v1021_v52 = vpop.xlane.xlu1 %1020  ;;  %979 = vmin.xlane.f32.xlu0 %v978_v51  ;;  %v983_v8 = vshll.u32 %v982_v38, 16 }
 0x841   :  { %v1006_v55 = vpop.xlane.xlu0 %1005  ;;  %vm1022_vm3 = vcmp.eq.f32.partialorder %v1019_v40, %v1021_v52  ;;  %v1027_v2 = vcvt.f32.s32 %v1021_v52 }
 0x842   :  { %v1023_v57 = vsel %vm1022_vm3, %v1018_v54, inf  ;;  %vm1007_vm4 = vcmp.eq.f32.partialorder %v1004_v5, %v1006_v55  ;;  %v1012_v3 = vcvt.f32.s32 %v1006_v55 }
 0x843   :  { %1024 = vmin.xlane.f32.xlu1 %v1023_v57  ;;  %v1008_v58 = vsel %vm1007_vm4, %v1003_v56, inf  ;;  %v1028_v48 = vshll.u32 %v1027_v2, 16 }
 0x844   :  { %1009 = vmin.xlane.f32.xlu0 %v1008_v58  ;;  %v1013_v13 = vshll.u32 %v1012_v3, 16 }
 0x8cc   :  { %v995_v63 = vpop.xlane.xlu1 %994 }
 0x8cd   :  { %v996_v4 = vcvt.f32.s32 %v995_v63  ;;  %v980_v6 = vpop.xlane.xlu0 %979 }
 0x8ce   :  { %v981_v9 = vcvt.f32.s32 %v980_v6 }
 0x8cf   :  { %v999_v10 = vadd.s32 %v998_v0, %v996_v4 }
 0x8d0   :  { %v984_v11 = vadd.s32 %v983_v8, %v981_v9  ;;  %v1025_v12 = vpop.xlane.xlu1 %1024 }
 0x8d1   :  { %vm1031_vm7 = vcmp.eq.s32.totalorder %v2520_v21, %v999_v10  ;;  %v1026_v53 = vcvt.f32.s32 %v1025_v12  ;;  %v1010_v14 = vpop.xlane.xlu0 %1009 }
 0x8d2   :  { %vm1030_vm8 = vcmp.eq.s32.totalorder %v2528_v24, %v984_v11  ;;  %v1011_v60 = vcvt.f32.s32 %v1010_v14  ;;  %v2557_v16 = vsel %vm1031_vm7, 2147483647, %v2520_v21  ;;  %v2561_v62 = vsel %vm1031_vm7, %v2510_v15, %v2516_v19 }
 0x8d3   :  { %v1029_v17 = vadd.s32 %v1028_v48, %v1026_v53  ;;  %v1057_v20 = vsel %vm302_vm6, %v2557_v16, 2147483647  ;;  %v2566_v23 = vsel %vm1030_vm8, 2147483647, %v2528_v24  ;;  %v2570_v1 = vsel %vm1030_vm8, %v2513_v18, %v2523_v22 }
 0x8d4   :  { %v1014_v25 = vadd.s32 %v1013_v13, %v1011_v60  ;;  %v1059_v26 = vshra.s32 %v1057_v20, 16  ;;  %v1042_v21 = vsel %vm302_vm6, %v2566_v23, 2147483647 }
 0x8d5   :  { %vm1033_vm9 = vcmp.eq.s32.totalorder %v2542_v61, %v1029_v17  ;;  %v1044_v19 = vshra.s32 %v1042_v21, 16  ;;  %v1043_v5 = vand.u32 65535, %v1042_v21 }
 0x8d6   :  { %vm1032_vm10 = vcmp.eq.s32.totalorder %v2550_v36, %v1014_v25  ;;  %v1061_v27 = vcvt.s32.f32 %v1059_v26  ;;  %v2577_v59 = vsel %vm1033_vm9, 2147483647, %v2542_v61  ;;  %v2588_v37 = vsel %vm1033_vm9, %v2532_v28, %v2538_v30 }
 0x8d7   :  { %v1046_v24 = vcvt.s32.f32 %v1044_v19  ;;  %v1087_v31 = vsel %vm302_vm6, %v2577_v59, 2147483647  ;;  %v2582_v22 = vsel %vm1032_vm10, 2147483647, %v2550_v36  ;;  %v2592_v61 = vsel %vm1032_vm10, %v2535_v29, %v2545_v32 }
 0x8d8   :  { %1062 = vmin.xlane.f32.xlu1 %v1061_v27  ;;  %v1089_v33 = vshra.s32 %v1087_v31, 16  ;;  %v1072_v34 = vsel %vm302_vm6, %v2582_v22, 2147483647  ;;  %v1058_v36 = vand.u32 65535, %v1057_v20  ;;  %v1088_v44 = vand.u32 65535, %v1087_v31 }
 0x8d9   :  { %1047 = vmin.xlane.f32.xlu0 %v1046_v24  ;;  %v1074_v39 = vshra.s32 %v1072_v34, 16  ;;  %v1045_v46 = vcvt.s32.f32 %v1043_v5  ;;  %v1073_v30 = vand.u32 65535, %v1072_v34  ;;  %v2111_v5 = vld [vmem:[%s2765_s17 + $0x8] sm:$0xff]  }
 0x8da   :  { %v1091_v41 = vcvt.s32.f32 %v1089_v33  ;;  %v1060_v43 = vcvt.s32.f32 %v1058_v36  ;;  %v1090_v32 = vcvt.s32.f32 %v1088_v44  ;;  %v2110_v36 = vld [vmem:[%s2765_s17] sm:$0xff]  }
 0x8db   :  { %v1076_v40 = vcvt.s32.f32 %v1074_v39  ;;  %v1075_v51 = vcvt.s32.f32 %v1073_v30  ;;  %2045 = vmatprep.subr.bf16.mxu0 %v2110_v36 }
 0x8dc   :  { %1092 = vmin.xlane.f32.xlu1 %v1091_v41 }
 0x8dd   :  { %1077 = vmin.xlane.f32.xlu0 %v1076_v40 }
 0x965   :  { %v1063_v42 = vpop.xlane.xlu1 %1062 }
 0x966   :  { %v1048_v45 = vpop.xlane.xlu0 %1047  ;;  %vm1064_vm11 = vcmp.eq.f32.partialorder %v1061_v27, %v1063_v42  ;;  %v1069_v55 = vcvt.f32.s32 %v1063_v42 }
 0x967   :  { %v1065_v47 = vsel %vm1064_vm11, %v1060_v43, inf  ;;  %vm1049_vm12 = vcmp.eq.f32.partialorder %v1046_v24, %v1048_v45  ;;  %v1054_v56 = vcvt.f32.s32 %v1048_v45 }
 0x968   :  { %1066 = vmin.xlane.f32.xlu1 %v1065_v47  ;;  %v1050_v7 = vsel %vm1049_vm12, %v1045_v46, inf  ;;  %v1070_v58 = vshll.u32 %v1069_v55, 16 }
 0x969   :  { %v1093_v49 = vpop.xlane.xlu1 %1092  ;;  %1051 = vmin.xlane.f32.xlu0 %v1050_v7  ;;  %v1055_v0 = vshll.u32 %v1054_v56, 16 }
 0x96a   :  { %v1078_v50 = vpop.xlane.xlu0 %1077  ;;  %vm1094_vm13 = vcmp.eq.f32.partialorder %v1091_v41, %v1093_v49  ;;  %v1099_v35 = vcvt.f32.s32 %v1093_v49 }
 0x96b   :  { %v1095_v52 = vsel %vm1094_vm13, %v1090_v32, inf  ;;  %vm1079_vm14 = vcmp.eq.f32.partialorder %v1076_v40, %v1078_v50  ;;  %v1084_v2 = vcvt.f32.s32 %v1078_v50  ;;  %v2636_v40 = vld [vmem:[%s2764_s16 + $0x8] sm:$0xff]  }
 0x96c   :  { %1096 = vmin.xlane.f32.xlu1 %v1095_v52  ;;  %v1080_v54 = vsel %vm1079_vm14, %v1075_v51, inf  ;;  %v1100_v9 = vshll.u32 %v1099_v35, 16 }
 0x96d   :  { %1081 = vmin.xlane.f32.xlu0 %v1080_v54  ;;  %v1085_v12 = vshll.u32 %v1084_v2, 16 }
 0x9f5   :  { %v1067_v57 = vpop.xlane.xlu1 %1066 }
 0x9f6   :  { %v1068_v38 = vcvt.f32.s32 %v1067_v57  ;;  %v1052_v63 = vpop.xlane.xlu0 %1051 }
 0x9f7   :  { %v1053_v3 = vcvt.f32.s32 %v1052_v63 }
 0x9f8   :  { %v1071_v4 = vadd.s32 %v1070_v58, %v1068_v38 }
 0x9f9   :  { %v1056_v6 = vadd.s32 %v1055_v0, %v1053_v3  ;;  %v1097_v8 = vpop.xlane.xlu1 %1096 }
 0x9fa   :  { %v1098_v10 = vcvt.f32.s32 %v1097_v8  ;;  %v1082_v11 = vpop.xlane.xlu0 %1081  ;;  %vm1103_vm15 = vcmp.eq.s32.totalorder %v2557_v16, %v1071_v4 }
 0x9fb   :  { %vm1102_vm0 = vcmp.eq.s32.totalorder %v2566_v23, %v1056_v6  ;;  %v1083_v48 = vcvt.f32.s32 %v1082_v11  ;;  %v1107_v13 = vsel %vm1103_vm15, %v2510_v15, %v2561_v62  ;;  %v2617_v23 = vld [vmem:[%s2764_s16] sm:$0xff]   ;;  %s1231_s16 = sld [smem:[#allocation5]] }
 0x9fc   :  { %v1101_v53 = vadd.s32 %v1100_v9, %v1098_v10  ;;  %v1210_v14 = vsel %vm302_vm6, %v1107_v13, 0.0  ;;  %v1106_v60 = vsel %vm1102_vm0, %v2513_v18, %v2570_v1  ;;  %2041 = vmatprep.mubr.msk.bf16.mxu1 %vm238_vm5, %v2617_v23 }
 0x9fd   :  { %v1086_v17 = vadd.s32 %v1085_v12, %v1083_v48  ;;  %1211 = vadd.xlane.f32.xlu1 %v1210_v14  ;;  %2031 = vmatprep.mubr.msk.f32.mxu0 %vm302_vm6, %v1106_v60  ;;  %v1207_v20 = vsel %vm302_vm6, %v1106_v60, 0.0  ;;  %v2113_v14 = vld [vmem:[%s2767_s19 + $0x8] sm:$0xff]   ;;  %v1864_v60 = vld [vmem:[%s2766_s18] ss:$0 sm:$0xff] }
 0x9fe   :  { %1208 = vadd.xlane.f32.xlu0 %v1207_v20  ;;  %2032 = vmatmul.mubr.msk.f32.vlgmr.msra.gmra.mrb[20].mxu0 %vm302_vm6, %v1107_v13  ;;  %vm1105_vm1 = vcmp.eq.s32.totalorder %v2577_v59, %v1101_v53  ;;  %v2112_v53 = vld [vmem:[%s2767_s19] sm:$0xff]  }
 0x9ff   :  { %vm1104_vm2 = vcmp.eq.s32.totalorder %v2582_v22, %v1086_v17  ;;  %v1109_v15 = vsel %vm1105_vm1, %v2532_v28, %v2588_v37  ;;  %2046 = vmatpush3.bf16.msra.mxu0 %v2110_v36 }
 0xa00   :  { %v1216_v16 = vsel %vm302_vm6, %v1109_v15, 0.0  ;;  %v1108_v18 = vsel %vm1104_vm2, %v2535_v29, %v2592_v61  ;;  %2047 = vmatprep.subr.bf16.mxu0 %v2111_v5 }
 0xa01   :  { %1217 = vadd.xlane.f32.xlu1 %v1216_v16  ;;  %2034 = vmatprep.mubr.msk.f32.mxu0 %vm302_vm6, %v1108_v18  ;;  %v1213_v62 = vsel %vm302_vm6, %v1108_v18, 0.0  ;;  %s1328_s0 = sadd.f32 1.0, %s1231_s16 }
 0xa02   :  { %1214 = vadd.xlane.f32.xlu0 %v1213_v62  ;;  %2035 = vmatmul.mubr.msk.f32.gmra.mrb[22].mxu0 %vm302_vm6, %v1109_v15 }
 0xa03   :  { %2048 = vmatpush3.bf16.msra.mxu0 %v2111_v5  ;;  %v1329_v57 = vstv %s1328_s0 }
 0xa8a   :  { %v1212_v28 = vpop.xlane.xlu1 %1211 }
 0xa8b   :  { %v1209_v1 = vpop.xlane.xlu0 %1208  ;;  %2126 = vrcp.f32 %v1212_v28 }
 0xa8c   :  { %2128 = vrcp.f32 %v1209_v1 }
 0xa8e   :  { %v1218_v29 = vpop.xlane.xlu1 %1217 }
 0xa8f   :  { %v1215_v25 = vpop.xlane.xlu0 %1214  ;;  %2130 = vrcp.f32 %v1218_v29 }
 0xa90   :  { %2132 = vrcp.f32 %v1215_v25 }
 0xa95   :  { %v2127_v26 = vpop.eup %2126 }
 0xa96   :  { %v2129_v19 = vpop.eup %2128 }
 0xa99   :  { %v2131_v31 = vpop.eup %2130 }
 0xa9a   :  { %v2133_v34 = vpop.eup %2132 }
 0xad1   :  { %v2033_v21 = vpop.f32.mrb[20].mxu0 }
 0xad2   :  { %v2621_v27 = vmul.f32 %v2127_v26, %v2033_v21  ;;  %v1188_v59 = vpop.f32.mrb[21].mxu0 }
 0xad3   :  { %v2623_v24 = vmul.f32 %v2129_v19, %v1188_v59  ;;  %v1869_v59 = vld [vmem:[%s2768_s20] ss:$0 sm:$0xff] }
 0xad4   :  { %v1331_v38 = vmul.f32 %v1329_v57, %v2621_v27 }
 0xad5   :  { %v2036_v22 = vpop.f32.mrb[22].mxu0  ;;  %v1242_v33 = vpack.c.bf16 %v2621_v27, %v2623_v24  ;;  %v1330_v63 = vmul.f32 %v1329_v57, %v2623_v24 }
 0xad6   :  { %v2627_v37 = vmul.f32 %v2131_v31, %v2036_v22  ;;  %v1198_v39 = vpop.f32.mrb[23].mxu0 }
 0xad7   :  { %v2629_v61 = vmul.f32 %v2133_v34, %v1198_v39  ;;  %2037 = vmatprep.subr.bf16.mxu1 %v1242_v33 }
 0xad8   :  { %2038 = vmatpush3.bf16.msra.mxu1 %v1242_v33  ;;  %v1333_v0 = vmul.f32 %v1329_v57, %v2627_v37 }
 0xad9   :  { %v1243_v41 = vpack.c.bf16 %v2627_v37, %v2629_v61  ;;  %v1332_v2 = vmul.f32 %v1329_v57, %v2629_v61 }
 0xadb   :  { %2039 = vmatprep.subr.bf16.mxu1 %v1243_v41 }
 0xadc   :  { %2040 = vmatpush3.bf16.msra.mxu1 %v1243_v41 }
 0xadd   :  { %2053 = vmatprep.subr.bf16.mxu1 %v2112_v53 }
 0xadf   :  { %2042 = vmatmul.mubr.msk.bf16.vlgmr.msra.gmra.mrb[20].mxu1 %vm238_vm5, %v2636_v40 }
 0xae0   :  { %2054 = vmatpush3.bf16.msra.mxu1 %v2112_v53 }
 0xae1   :  { %2055 = vmatprep.subr.bf16.mxu1 %v2113_v14 }
 0xae4   :  { %2056 = vmatpush3.bf16.msra.mxu1 %v2113_v14 }
 0xbb2   :  { %v2043_v42 = vpop.f32.mrb[20].mxu1 }
 0xbb3   :  { %v1294_v43 = vpop.f32.mrb[21].mxu1  ;;  %v1312_v7 = vsel %vm238_vm5, %v2043_v42, 0.0 }
 0xbb4   :  { %v2044_v44 = vpop.f32.mrb[22].mxu1  ;;  %v1309_v46 = vsel %vm238_vm5, %v1294_v43, 0.0 }
 0xbb5   :  { %v1297_v45 = vpop.f32.mrb[23].mxu1  ;;  %v1314_v32 = vsel %vm238_vm5, %v2044_v44, 0.0 }
 0xbb6   :  { %v1310_v30 = vsel %vm238_vm5, %v1297_v45, 0.0 }
 0xbb7   :  { %v1311_v47 = vadd.f32 %v1310_v30, %v1309_v46 }
 0xbb9   :  { %v1313_v49 = vadd.f32 %v1312_v7, %v1311_v47 }
 0xbbb   :  { %v1315_v50 = vadd.f32 %v1314_v32, %v1313_v49 }
 0xbbd   :  { %v1316_v51 = vrot.slane %v1315_v50, 4 }
 0xbbf   :  { %v1317_v52 = vadd.f32 %v1316_v51, %v1315_v50 }
 0xbc1   :  { %v1318_v54 = vrot.slane %v1317_v52, 2 }
 0xbc3   :  { %v1319_v55 = vadd.f32 %v1318_v54, %v1317_v52 }
 0xbc5   :  { %v1320_v56 = vrot.slane %v1319_v55, 1 }
 0xbc7   :  { %v1321_v58 = vadd.f32 %v1320_v56, %v1319_v55 }
 0xbc9   :  { %v1323_v35 = vmul.f32 0.03125, %v1321_v58 }
 0xbcb   :  { %v1324_v3 = vsub.f32 %v1294_v43, %v1323_v35  ;;  %v1325_v4 = vsub.f32 %v1297_v45, %v1323_v35  ;;  %v1326_v6 = vsub.f32 %v2043_v42, %v1323_v35  ;;  %v1327_v8 = vsub.f32 %v2044_v44, %v1323_v35 }
 0xbcd   :  { %v1334_v9 = vadd.f32 %v1330_v63, %v1324_v3  ;;  %v1335_v10 = vadd.f32 %v1331_v38, %v1325_v4  ;;  %v1336_v11 = vadd.f32 %v1332_v2, %v1326_v6  ;;  %v1337_v12 = vadd.f32 %v1333_v0, %v1327_v8  ;;  %v2114_v4 = vld [vmem:[%s2765_s17 + $0x10] sm:$0xff]   ;;  %v2115_v6 = vld [vmem:[%s2765_s17 + $0x18] sm:$0xff]   ;;  %s1602_s17 = sadd.f32 1.0, %s1874_s25 }
 0xbce   :  { %2069 = vmatprep.subr.bf16.mxu1 %v2114_v4 }
 0xbcf   :  { %v1338_v48 = vpack.c.bf16 %v1335_v10, %v1334_v9  ;;  %v1339_v13 = vpack.c.bf16 %v1337_v12, %v1336_v11 }
 0xbd1   :  { %2049 = vmatprep.mubr.msk.bf16.mxu0 %vm238_vm5, %v1338_v48 }
 0xbd2   :  { %2050 = vmatmul.mubr.msk.bf16.vlgmr.msra.gmra.mrb[24].mxu0 %vm238_vm5, %v1339_v13 }
 0xbd3   :  { %2065 = vmatprep.mubr.msk.bf16.mxu0 %vm238_vm5, %v2617_v23 }
 0xca5   :  { %v2051_v17 = vpop.f32.mrb[24].mxu0 }
 0xca6   :  { %v1407_v20 = vadd.f32 %v2051_v17, %v1864_v60  ;;  %v1398_v15 = vpop.f32.mrb[25].mxu0 }
 0xca7   :  { %v1399_v16 = vadd.f32 %v1864_v60, %v1398_v15  ;;  %v2052_v18 = vpop.f32.mrb[26].mxu0 }
 0xca8   :  { %v1410_v62 = vadd.f32 %v2052_v18, %v1864_v60  ;;  %v1401_v23 = vpop.f32.mrb[27].mxu0  ;;  %v1415_v1 = vmax.f32 %v1407_v20, 0.0 }
 0xca9   :  { %v1402_v28 = vadd.f32 %v1864_v60, %v1401_v23  ;;  %v1413_v25 = vmax.f32 %v1399_v16, 0.0  ;;  %v1603_v23 = vstv %s1602_s17 }
 0xcaa   :  { %v1416_v29 = vmax.f32 %v1410_v62, 0.0 }
 0xcab   :  { %v1414_v26 = vmax.f32 %v1402_v28, 0.0 }
 0xcac   :  { %v1418_v21 = vpack.c.bf16 %v1416_v29, %v1415_v1 }
 0xcad   :  { %v1417_v19 = vpack.c.bf16 %v1414_v26, %v1413_v25 }
 0xcaf   :  { %2057 = vmatprep.mubr.msk.bf16.mxu1 %vm238_vm5, %v1417_v19 }
 0xcb0   :  { %2058 = vmatmul.mubr.msk.bf16.vlgmr.msra.gmra.mrb[24].mxu1 %vm238_vm5, %v1418_v21 }
 0xcb1   :  { %2070 = vmatpush3.bf16.msra.mxu1 %v2114_v4 }
 0xcb2   :  { %2071 = vmatprep.subr.bf16.mxu1 %v2115_v6 }
 0xcb5   :  { %2072 = vmatpush3.bf16.msra.mxu1 %v2115_v6 }
 0xd83   :  { %v2059_v31 = vpop.f32.mrb[24].mxu1 }
 0xd84   :  { %v1486_v22 = vadd.f32 %v2059_v31, %v1869_v59  ;;  %v1477_v33 = vpop.f32.mrb[25].mxu1 }
 0xd85   :  { %v1478_v34 = vadd.f32 %v1869_v59, %v1477_v33  ;;  %v2060_v39 = vpop.f32.mrb[26].mxu1 }
 0xd86   :  { %v1489_v41 = vadd.f32 %v2060_v39, %v1869_v59  ;;  %v1480_v36 = vpop.f32.mrb[27].mxu1  ;;  %v1494_v5 = vmax.f32 %v1486_v22, 0.0 }
 0xd87   :  { %v1492_v42 = vmax.f32 %v1478_v34, 0.0  ;;  %v1481_v43 = vadd.f32 %v1869_v59, %v1480_v36 }
 0xd88   :  { %v1495_v45 = vmax.f32 %v1489_v41, 0.0  ;;  %v1498_v30 = vadd.f32 %v1494_v5, %v2629_v61  ;;  %v2116_v5 = vld [vmem:[%s2767_s19 + $0x10] sm:$0xff]  }
 0xd89   :  { %v1496_v44 = vadd.f32 %v1492_v42, %v2623_v24  ;;  %v1493_v46 = vmax.f32 %v1481_v43, 0.0  ;;  %v2117_v42 = vld [vmem:[%s2767_s19 + $0x18] sm:$0xff]   ;;  %v1887_v43 = vld [vmem:[%s2766_s18 + $0x1] ss:$0 sm:$0xff] }
 0xd8a   :  { %v1499_v49 = vadd.f32 %v1495_v45, %v2627_v37  ;;  %v1503_v51 = vsel %vm238_vm5, %v1498_v30, 0.0 }
 0xd8b   :  { %v1497_v47 = vadd.f32 %v1493_v46, %v2621_v27  ;;  %v1500_v7 = vsel %vm238_vm5, %v1496_v44, 0.0 }
 0xd8c   :  { %v1505_v54 = vsel %vm238_vm5, %v1499_v49, 0.0 }
 0xd8d   :  { %v1501_v32 = vsel %vm238_vm5, %v1497_v47, 0.0 }
 0xd8e   :  { %v1502_v50 = vadd.f32 %v1501_v32, %v1500_v7 }
 0xd90   :  { %v1504_v52 = vadd.f32 %v1503_v51, %v1502_v50 }
 0xd92   :  { %v1506_v55 = vadd.f32 %v1505_v54, %v1504_v52 }
 0xd94   :  { %v1507_v24 = vrot.slane %v1506_v55, 4 }
 0xd96   :  { %v1508_v56 = vadd.f32 %v1507_v24, %v1506_v55 }
 0xd98   :  { %v1509_v57 = vrot.slane %v1508_v56, 2 }
 0xd9a   :  { %v1510_v58 = vadd.f32 %v1509_v57, %v1508_v56  ;;  %v1892_v56 = vld [vmem:[%s2768_s20 + $0x1] ss:$0 sm:$0xff]  ;;  %s2191_s20 = smov [#allocation7]  }
 0xd9b   :  { %s1801_s3 = sshll.u32 %s2191_s20, 4  ;;  %s1802_s3 = int_to_ptr.vmem [resolvable:$true] %s1801_s3 }
 0xd9c   :  { %v1511_v61 = vrot.slane %v1510_v58, 1  ;;  %s2158_s6 = scalar_lea.vmem %s1802_s3, 512  ;;  %p2163_p11 = scmp.lt.s32.totalorder %s1802_s3, %s1802_s3 }
 0xd9d   :  { %p2159_p10 = scmp.ne.s32.totalorder %s1802_s3, %s2158_s6  ;;  %p2164_p12 = scmp.lt.s32.totalorder %s2158_s6, %s2158_s6 }
 0xd9e   :  { %v1512_v35 = vadd.f32 %v1511_v61, %v1510_v58 }
 0xd9f   :  { %p2165_p13 = por %p2164_p12, %p2163_p11 }
 0xda0   :  { %v1513_v27 = vmul.f32 0.03125, %v1512_v35 }
 0xda1   :  { %p2166_p0 = pnand %p2165_p13, %p2159_p10 }
 0xda2   :  { %v2680_v38 = vsub.f32 %v1497_v47, %v1513_v27  ;;  %v2682_v63 = vsub.f32 %v1496_v44, %v1513_v27  ;;  %v2684_v37 = vsub.f32 %v1498_v30, %v1513_v27  ;;  %v2686_v0 = vsub.f32 %v1499_v49, %v1513_v27 }
 0xda4   :  { %v1533_v2 = vpack.c.bf16 %v2680_v38, %v2682_v63  ;;  %v1534_v3 = vpack.c.bf16 %v2686_v0, %v2684_v37  ;;  %v1604_v1 = vmul.f32 %v1603_v23, %v2682_v63  ;;  %v1605_v29 = vmul.f32 %v1603_v23, %v2680_v38 }
 0xda5   :  { %v1606_v25 = vmul.f32 %v1603_v23, %v2684_v37  ;;  %v1607_v26 = vmul.f32 %v1603_v23, %v2686_v0 }
 0xda6   :  { %2061 = vmatprep.subr.bf16.mxu0 %v1533_v2 }
 0xda7   :  { %2062 = vmatpush3.bf16.msra.mxu0 %v1533_v2 }
 0xda8   :  { %2063 = vmatprep.subr.bf16.mxu0 %v1534_v3 }
 0xdab   :  { %2064 = vmatpush3.bf16.msra.mxu0 %v1534_v3 }
 0xdac   :  { %2077 = vmatprep.subr.bf16.mxu0 %v2116_v5 }
 0xdae   :  { %2066 = vmatmul.mubr.msk.bf16.vlgmr.msra.gmra.mrb[28].mxu0 %vm238_vm5, %v2636_v40 }
 0xdaf   :  { %2078 = vmatpush3.bf16.msra.mxu0 %v2116_v5 }
 0xdb0   :  { %2079 = vmatprep.subr.bf16.mxu0 %v2117_v42 }
 0xdb3   :  { %2080 = vmatpush3.bf16.msra.mxu0 %v2117_v42 }
 0xe81   :  { %v2067_v8 = vpop.f32.mrb[28].mxu0 }
 0xe82   :  { %v1569_v9 = vpop.f32.mrb[29].mxu0  ;;  %v1587_v13 = vsel %vm238_vm5, %v2067_v8, 0.0 }
 0xe83   :  { %v2068_v10 = vpop.f32.mrb[30].mxu0  ;;  %v1584_v12 = vsel %vm238_vm5, %v1569_v9, 0.0 }
 0xe84   :  { %v1572_v11 = vpop.f32.mrb[31].mxu0  ;;  %v1589_v14 = vsel %vm238_vm5, %v2068_v10, 0.0 }
 0xe85   :  { %v1585_v40 = vsel %vm238_vm5, %v1572_v11, 0.0 }
 0xe86   :  { %v1586_v48 = vadd.f32 %v1585_v40, %v1584_v12 }
 0xe88   :  { %v1588_v53 = vadd.f32 %v1587_v13, %v1586_v48 }
 0xe8a   :  { %v1590_v60 = vadd.f32 %v1589_v14, %v1588_v53 }
 0xe8c   :  { %v1591_v17 = vrot.slane %v1590_v60, 4 }
 0xe8e   :  { %v1592_v20 = vadd.f32 %v1591_v17, %v1590_v60 }
 0xe90   :  { %v1593_v15 = vrot.slane %v1592_v20, 2 }
 0xe92   :  { %v1594_v16 = vadd.f32 %v1593_v15, %v1592_v20 }
 0xe94   :  { %v1595_v18 = vrot.slane %v1594_v16, 1 }
 0xe96   :  { %v1596_v62 = vadd.f32 %v1595_v18, %v1594_v16 }
 0xe98   :  { %v1597_v28 = vmul.f32 0.03125, %v1596_v62 }
 0xe9a   :  { %v1598_v21 = vsub.f32 %v1569_v9, %v1597_v28  ;;  %v1599_v19 = vsub.f32 %v1572_v11, %v1597_v28  ;;  %v1600_v59 = vsub.f32 %v2067_v8, %v1597_v28  ;;  %v1601_v31 = vsub.f32 %v2068_v10, %v1597_v28 }
 0xe9c   :  { %v1608_v22 = vadd.f32 %v1604_v1, %v1598_v21  ;;  %v1609_v33 = vadd.f32 %v1605_v29, %v1599_v19  ;;  %v1610_v34 = vadd.f32 %v1606_v25, %v1600_v59  ;;  %v1611_v39 = vadd.f32 %v1607_v26, %v1601_v31 }
 0xe9e   :  { %v1612_v41 = vpack.c.bf16 %v1609_v33, %v1608_v22  ;;  %v1613_v36 = vpack.c.bf16 %v1611_v39, %v1610_v34 }
 0xea0   :  { %2073 = vmatprep.mubr.msk.bf16.mxu1 %vm238_vm5, %v1612_v41 }
 0xea1   :  { %2074 = vmatmul.mubr.msk.bf16.vlgmr.msra.gmra.mrb[28].mxu1 %vm238_vm5, %v1613_v36 }
 0xf74   :  { %v2075_v44 = vpop.f32.mrb[28].mxu1 }
 0xf75   :  { %v1681_v45 = vadd.f32 %v2075_v44, %v1887_v43  ;;  %v1672_v46 = vpop.f32.mrb[29].mxu1 }
 0xf76   :  { %v1673_v30 = vadd.f32 %v1887_v43, %v1672_v46  ;;  %v2076_v47 = vpop.f32.mrb[30].mxu1 }
 0xf77   :  { %v1684_v7 = vadd.f32 %v2076_v47, %v1887_v43  ;;  %v1675_v49 = vpop.f32.mrb[31].mxu1  ;;  %v1689_v50 = vmax.f32 %v1681_v45, 0.0 }
 0xf78   :  { %v1676_v32 = vadd.f32 %v1887_v43, %v1675_v49  ;;  %v1687_v52 = vmax.f32 %v1673_v30, 0.0 }
 0xf79   :  { %v1690_v51 = vmax.f32 %v1684_v7, 0.0 }
 0xf7a   :  { %v1688_v54 = vmax.f32 %v1676_v32, 0.0 }
 0xf7b   :  { %v1692_v55 = vpack.c.bf16 %v1690_v51, %v1689_v50 }
 0xf7c   :  { %v1691_v24 = vpack.c.bf16 %v1688_v54, %v1687_v52 }
 0xf7e   :  { %2081 = vmatprep.mubr.msk.bf16.mxu0 %vm238_vm5, %v1691_v24 }
 0xf7f   :  { %2082 = vmatmul.mubr.msk.bf16.vlgmr.msra.gmra.mrb[32].mxu0 %vm238_vm5, %v1692_v55 }
0x1052   :  { %v2083_v57 = vpop.f32.mrb[32].mxu0 }
0x1053   :  { %v1760_v58 = vadd.f32 %v2083_v57, %v1892_v56  ;;  %v1751_v61 = vpop.f32.mrb[33].mxu0 }
0x1054   :  { %v1752_v35 = vadd.f32 %v1892_v56, %v1751_v61  ;;  %v2084_v27 = vpop.f32.mrb[34].mxu0 }
0x1055   :  { %v1763_v2 = vadd.f32 %v2084_v27, %v1892_v56  ;;  %v1754_v3 = vpop.f32.mrb[35].mxu0  ;;  %v1768_v4 = vmax.f32 %v1760_v58, 0.0 }
0x1056   :  { %v1766_v6 = vmax.f32 %v1752_v35, 0.0  ;;  %v1755_v8 = vadd.f32 %v1892_v56, %v1754_v3 }
0x1057   :  { %v1769_v10 = vmax.f32 %v1763_v2, 0.0  ;;  %v1772_v12 = vadd.f32 %v1768_v4, %v2684_v37 }
0x1058   :  { %v1770_v9 = vadd.f32 %v1766_v6, %v2682_v63  ;;  %v1767_v11 = vmax.f32 %v1755_v8, 0.0 }
0x1059   :  { %v1773_v13 = vadd.f32 %v1769_v10, %v2686_v0  ;;  %v1777_v60 = vsel %vm238_vm5, %v1772_v12, 0.0 }
0x105a   :  { %v1771_v40 = vadd.f32 %v1767_v11, %v2680_v38  ;;  %v1774_v48 = vsel %vm238_vm5, %v1770_v9, 0.0 }
0x105b   :  { %v1779_v20 = vsel %vm238_vm5, %v1773_v13, 0.0 }
0x105c   :  { %v1775_v53 = vsel %vm238_vm5, %v1771_v40, 0.0 }
0x105d   :  { %v1776_v14 = vadd.f32 %v1775_v53, %v1774_v48 }
0x105f   :  { %v1778_v17 = vadd.f32 %v1777_v60, %v1776_v14 }
0x1061   :  { %v1780_v15 = vadd.f32 %v1779_v20, %v1778_v17 }
0x1063   :  { %v1781_v63 = vrot.slane %v1780_v15, 4 }
0x1065   :  { %v1782_v16 = vadd.f32 %v1781_v63, %v1780_v15 }
0x1067   :  { %v1783_v18 = vrot.slane %v1782_v16, 2 }
0x1069   :  { %v1784_v62 = vadd.f32 %v1783_v18, %v1782_v16 }
0x106b   :  { %v1785_v37 = vrot.slane %v1784_v62, 1 }
0x106d   :  { %v1786_v23 = vadd.f32 %v1785_v37, %v1784_v62 }
0x106f   :  { %v1787_v38 = vmul.f32 0.03125, %v1786_v23 }
0x1071   :  { %v1789_v28 = vsub.f32 %v1771_v40, %v1787_v38  ;;  %v1788_v0 = vsub.f32 %v1770_v9, %v1787_v38  ;;  %v1790_v1 = vsub.f32 %v1772_v12, %v1787_v38  ;;  %v1791_v29 = vsub.f32 %v1773_v13, %v1787_v38 }
0x1073   :  { %1793 = vst.msk [vmem:[#allocation7 + $0x8] sm:$0xff] %vm238_vm5, %v1789_v28  ;;  %1792 = vst.msk [vmem:[#allocation7] sm:$0xff] %vm238_vm5, %v1788_v0 }
0x1074   :  { %1794 = vst.msk [vmem:[#allocation7 + $0x10] sm:$0xff] %vm238_vm5, %v1790_v1  ;;  %1795 = vst.msk [vmem:[#allocation7 + $0x18] sm:$0xff] %vm238_vm5, %v1791_v29 }
0x1075   :  { %2169 = shalt.err (!%p2166_p0)
}
0x1076   :  { %s2170_s29 = scalar_lea.hbm %s2769_s21, 512 }
0x1077   :  { %p2171_p1 = scmp.ne.s32.totalorder %s2769_s21, %s2170_s29  ;;  %p2174_p2 = scmp.lt.u32.totalorder %s2170_s29, %s2769_s21 }
0x1079   :  { %p2176_p3 = pnand %p2174_p2, %p2171_p1 }
0x107b   :  { %2179 = shalt.err (!%p2176_p3)
}
0x107c   :  { %s2192_s30 = smov 128   ;;  %s2193_s5 = smov 8  }
0x107d   :  { %1807 = dma.vmem_to_hbm [thread:$0]  %s1802_s3, 512, %s2769_s21, [#allocation3], %s2192_s30, %s2192_s30, %s2193_s5  }
0x107e   :  { %2184 = dma.done.wait [#allocation3], 512  }
0x107f   :  { %2185 = vsyncadd [#allocation3], 4294966784 }
0x1080   :  { %1811 = vsyncpa [#allocation3], 1 }
0x1081   :  { %1812 = vsyncpa [#allocation4], 1 }
0x1082   :  { %1813 = vsyncpa [#allocation6], 1 }

</bundles_post_ra>
